<compile_context>
chip_gen: v5e
topology: v5e:2x2
jax: 0.10.0
libtpu: 0.0.40
codegen_flags: <defaults>
</compile_context>

<pallas_src>
import functools

import jax
import jax.numpy as jnp
from jax import lax
from jax.experimental import pallas as pl
from jax.experimental.pallas import tpu as pltpu


def _round_up(x, m):
    return (x + m - 1) // m * m


def _aspp_kernel(x_hbm, w_ref, scale_ref, bias_ref, o_ref,
                 halo_ref, patch_ref, sem_ref, *,
                 K, dil, TH, W_out_pad, HALO, Cin_p, Hp, rows_per_chunk):
    """One (batch, cout-tile, row-chunk) grid step.

    x_hbm:     (N*Hp, Wp, Cin_p)  zero-padded input, resident in HBM (pl.ANY)
    w_ref:     (K*K*Cin_p, TCout) folded conv weights, tap-major (bf16, VMEM)
    scale_ref: (1, TCout)         folded BN scale  gamma / sqrt(var+eps)   (f32)
    bias_ref:  (1, TCout)         folded BN shift  beta - mean*scale       (f32)
    o_ref:     (1, rows_per_chunk*TH*W_out_pad, TCout)  flat output chunk
    halo_ref:  (2, HALO, Wp, Cin_p)       double-buffered input halo (VMEM)
    patch_ref: (TH*W_out_pad, K*K*Cin_p)  im2col scratch (VMEM)
    sem_ref:   (2,)                       DMA semaphores (one per halo slot)
    """
    n = pl.program_id(0)
    chunk = pl.program_id(2)
    row_tile0 = chunk * rows_per_chunk          # first row tile of this chunk
    TPW = TH * W_out_pad

    def halo_copy(i, slot):
        # Padded-image rows [r0, r0 + HALO) of batch element n.
        r0 = n * Hp + (row_tile0 + i) * TH
        return pltpu.make_async_copy(
            x_hbm.at[pl.ds(r0, HALO)], halo_ref.at[slot], sem_ref.at[slot])

    halo_copy(0, 0).start()                     # prime slot 0

    @pl.loop(0, rows_per_chunk)
    def _(i):
        slot = i % 2
        halo_copy(i, slot).wait()

        @pl.when(i + 1 < rows_per_chunk)        # prefetch next row tile
        def _():
            halo_copy(i + 1, 1 - slot).start()

        # im2col gather: all K*K dilated taps -> one deep MXU contraction.
        hbuf = halo_ref.at[slot]
        for kh in range(K):
            for kw in range(K):
                tap = kh * K + kw
                win = hbuf[kh * dil:kh * dil + TH,
                           kw * dil:kw * dil + W_out_pad, :]
                patch_ref[:, tap * Cin_p:(tap + 1) * Cin_p] = (
                    win.reshape(TPW, Cin_p))

        acc = jnp.dot(patch_ref[...], w_ref[...],
                      preferred_element_type=jnp.float32)        # (TPW, TCout) f32
        y = jnp.maximum(acc * scale_ref[0] + bias_ref[0], 0.0)   # folded BN + ReLU
        off = pl.multiple_of(i * TPW, 8)
        o_ref[0, pl.ds(off, TPW), :] = y.astype(o_ref.dtype)


def aspp_module_pallas(x_nchw, weight_oihw, bn_gamma, bn_beta, bn_mean, bn_var,
                       *, padding, dilation, eps=1e-5,
                       tile_h=8, tile_cout=None, compute_dtype=jnp.bfloat16):
    """Forward pass of _ASPPModule.  Inputs follow PyTorch conventions (NCHW/OIHW)."""
    N, Cin, H, W = x_nchw.shape
    Cout, Cin_w, K, K2 = weight_oihw.shape
    assert Cin_w == Cin and K == K2

    # Output spatial size of the stride-1 dilated conv (matches PyTorch).
    H_out = H + 2 * padding - dilation * (K - 1)
    W_out = W + 2 * padding - dilation * (K - 1)
    assert H_out > 0 and W_out > 0, "conv output size must be positive"

    LANE, SUB = 128, 8

    # ---- tile sizes -------------------------------------------------------
    if tile_cout is None:
        kind = jax.devices()[0].device_kind.lower()
        tile_cout = 256 if ("v6" in kind or "v7" in kind) else 128
    Cin_p = _round_up(Cin, LANE)                     # lane-aligned tap stride
    TCout = min(tile_cout, _round_up(Cout, LANE))    # lane-dense output tile
    Cout_pad = _round_up(Cout, TCout)
    n_cout = Cout_pad // TCout

    TH = tile_h
    H_out_pad = _round_up(H_out, TH)                 # cdiv row tiling (padded tail)
    n_row = H_out_pad // TH
    W_out_pad = _round_up(W_out, SUB)                # sublane-dense LHS / stores

    HALO = TH + (K - 1) * dilation                   # input rows per row tile
    Hp = H_out_pad + (K - 1) * dilation              # padded-input rows
    Wp = _round_up(W_out_pad + (K - 1) * dilation, SUB)   # padded-input cols

    # Extra parallel grid axis (row chunks) for megacore / v7x 2-TC sharding.
    n_chunk = 2 if (n_row % 2 == 0 and n_row >= 2) else 1
    rows_per_chunk = n_row // n_chunk

    # ---- glue (plain JAX): layout, zero-padding, weight / BN folding ------
    # TODO(synk): fold this zero-padding into the halo DMA and keep the model
    # NHWC end-to-end to remove these full-activation HBM round trips.
    x_nhwc = jnp.transpose(x_nchw, (0, 2, 3, 1))
    x_pad = jnp.pad(
        x_nhwc,
        ((0, 0),
         (padding, Hp - H - padding),
         (padding, Wp - W - padding),
         (0, Cin_p - Cin))).astype(compute_dtype)
    x_flat = x_pad.reshape(N * Hp, Wp, Cin_p)        # metadata-only reshape

    # OIHW -> (kh, kw, Cin_p, Cout_pad) -> (K*K*Cin_p, Cout_pad): row order
    # matches the tap-major / Cin-minor im2col columns built in the kernel.
    w = jnp.transpose(weight_oihw, (2, 3, 1, 0))
    w = jnp.pad(w, ((0, 0), (0, 0), (0, Cin_p - Cin), (0, Cout_pad - Cout)))
    w_fold = w.reshape(K * K * Cin_p, Cout_pad).astype(compute_dtype)

    # Fold BatchNorm (inference, running stats) into per-channel scale/shift.
    scale = bn_gamma / jnp.sqrt(bn_var + eps)
    shift = bn_beta - bn_mean * scale
    scale = jnp.pad(scale, (0, Cout_pad - Cout)).reshape(1, Cout_pad).astype(jnp.float32)
    shift = jnp.pad(shift, (0, Cout_pad - Cout)).reshape(1, Cout_pad).astype(jnp.float32)

    # ---- pallas_call --------------------------------------------------------
    KKC = K * K * Cin_p
    TPW = TH * W_out_pad
    out_rows = H_out_pad * W_out_pad
    chunk_rows = rows_per_chunk * TPW
    out_dtype = x_nchw.dtype

    kernel = functools.partial(
        _aspp_kernel, K=K, dil=dilation, TH=TH, W_out_pad=W_out_pad,
        HALO=HALO, Cin_p=Cin_p, Hp=Hp, rows_per_chunk=rows_per_chunk)

    # VMEM limit: ~3/4 of physical per-core VMEM (64 MiB on v7x, 128 MiB on
    # v5e/v6e), capped at 100 MiB -- never a blanket 64 MiB request.
    try:
        vmem_cap = pltpu.get_tpu_info().vmem_capacity_bytes
    except Exception:
        vmem_cap = 128 * 1024 * 1024
    vmem_limit = int(min(vmem_cap * 3 // 4, 100 * 1024 * 1024))

    in_bytes = jnp.dtype(compute_dtype).itemsize
    cost = pl.CostEstimate(
        flops=2 * N * out_rows * KKC * Cout_pad,
        transcendentals=0,
        bytes_accessed=(N * n_cout * n_row * HALO * Wp * Cin_p * in_bytes
                        + KKC * Cout_pad * in_bytes
                        + N * out_rows * Cout_pad * jnp.dtype(out_dtype).itemsize))

    out_flat = pl.pallas_call(
        kernel,
        out_shape=jax.ShapeDtypeStruct((N, out_rows, Cout_pad), out_dtype),
        grid=(N, n_cout, n_chunk),
        in_specs=[
            # Activation stays in HBM; halo'd row tiles are DMA'd manually.
            pl.BlockSpec(memory_space=pl.ANY),
            # Weight tile: block index is constant across the row-chunk axis, so
            # it is fetched only n_cout times per image and stays VMEM-resident.
            pl.BlockSpec((KKC, TCout), lambda n, c, ch: (0, c)),
            pl.BlockSpec((1, TCout), lambda n, c, ch: (0, c)),
            pl.BlockSpec((1, TCout), lambda n, c, ch: (0, c)),
        ],
        out_specs=pl.BlockSpec((1, chunk_rows, TCout), lambda n, c, ch: (n, ch, c)),
        scratch_shapes=[
            pltpu.VMEM((2, HALO, Wp, Cin_p), compute_dtype),   # halo double buffer
            pltpu.VMEM((TPW, KKC), compute_dtype),             # im2col patch
            pltpu.SemaphoreType.DMA((2,)),
        ],
        compiler_params=pltpu.CompilerParams(
            dimension_semantics=("parallel", "parallel", "parallel"),
            vmem_limit_bytes=vmem_limit,
        ),
        cost_estimate=cost,
    )(x_flat, w_fold, scale, shift)

    out = out_flat.reshape(N, H_out_pad, W_out_pad, Cout_pad)
    out = out[:, :H_out, :W_out, :Cout]              # drop row/col/lane padding
    return jnp.transpose(out, (0, 3, 1, 2))          # back to NCHW


def _reference(x_nchw, weight_oihw, bn_gamma, bn_beta, bn_mean, bn_var,
               *, padding, dilation, eps=1e-5):
    y = lax.conv_general_dilated(
        x_nchw, weight_oihw,
        window_strides=(1, 1),
        padding=((padding, padding), (padding, padding)),
        rhs_dilation=(dilation, dilation),
        dimension_numbers=("NCHW", "OIHW", "NCHW"),
    )
    scale = (bn_gamma / jnp.sqrt(bn_var + eps)).reshape(1, -1, 1, 1)
    shift = (bn_beta - bn_mean * bn_gamma / jnp.sqrt(bn_var + eps)).reshape(1, -1, 1, 1)
    return jnp.maximum(y * scale + shift, 0.0)


def _run_case(seed, *, N, Cin, H, W, Cout, K, dilation, padding, **kwargs):
    key = jax.random.PRNGKey(seed)
    kx, kw, kg, kb, km, kv = jax.random.split(key, 6)

    x = jax.random.normal(kx, (N, Cin, H, W), dtype=jnp.float32)

    # kaiming_normal_ (fan_in, relu gain): std = sqrt(2 / (Cin*K*K))
    fan_in = Cin * K * K
    weight = jax.random.normal(kw, (Cout, Cin, K, K), dtype=jnp.float32) * jnp.sqrt(2.0 / fan_in)

    # BatchNorm (module init: weight=1, bias=0) with mildly perturbed running
    # stats so the folded scale/shift path is actually exercised.
    bn_gamma = 1.0 + 0.1 * jax.random.normal(kg, (Cout,), jnp.float32)
    bn_beta = 0.1 * jax.random.normal(kb, (Cout,), jnp.float32)
    bn_mean = 0.1 * jax.random.normal(km, (Cout,), jnp.float32)
    bn_var = jax.random.uniform(kv, (Cout,), jnp.float32, minval=0.5, maxval=1.5)

    out = aspp_module_pallas(x, weight, bn_gamma, bn_beta, bn_mean, bn_var,
                             padding=padding, dilation=dilation, **kwargs)
    out = jax.block_until_ready(out)

    H_out = H + 2 * padding - dilation * (K - 1)
    W_out = W + 2 * padding - dilation * (K - 1)
    assert out.shape == (N, Cout, H_out, W_out), out.shape

    # Strict check: the kernel feeds the MXU bf16 operands with f32 accumulation,
    # so compare against an f32 reference evaluated on bf16-rounded inputs.
    xq = x.astype(jnp.bfloat16).astype(jnp.float32)
    wq = weight.astype(jnp.bfloat16).astype(jnp.float32)
    ref_q = _reference(xq, wq, bn_gamma, bn_beta, bn_mean, bn_var,
                       padding=padding, dilation=dilation)
    assert jnp.allclose(out, ref_q, rtol=1e-3, atol=1e-3), \
        "mismatch vs bf16-rounded reference"

    # Loose sanity check vs the pure-f32 reference (covers only the bf16
    # input-rounding error of the MXU operands).
    ref = _reference(x, weight, bn_gamma, bn_beta, bn_mean, bn_var,
                     padding=padding, dilation=dilation)
    assert jnp.allclose(out, ref, rtol=1e-1, atol=1e-1), "mismatch vs f32 reference"


if __name__ == "__main__":
    # Standard 3x3 dilated ASPP branch (dilation == padding), small shapes.
    _run_case(0, N=2, Cin=4, H=16, W=16, Cout=8, K=3, dilation=6, padding=6)
    # Non-divisible H_out / W_out -> exercises cdiv row tiling + tail padding.
    _run_case(1, N=1, Cin=3, H=15, W=17, Cout=10, K=3, dilation=2, padding=2)
    # 1x1 ASPP branch + more than one Cout tile (n_cout = 2 with tile_cout=128).
    _run_case(2, N=1, Cin=5, H=9, W=11, Cout=200, K=1, dilation=1, padding=0,
              tile_cout=128)
    print("KERNEL_OK")
</pallas_src>

<mosaic_0001>
module attributes {stable_mosaic.version = 11 : i64} {
  func.func @_aspp_kernel(%arg0: i32, %arg1: i32, %arg2: i32, %arg3: memref<56x32x128xbf16, #tpu.memory_space<any>>, %arg4: memref<1152x128xbf16, #tpu.memory_space<vmem>>, %arg5: memref<1x128xf32, #tpu.memory_space<vmem>>, %arg6: memref<1x128xf32, #tpu.memory_space<vmem>>, %arg7: memref<1x128x128xf32, #tpu.memory_space<vmem>>, %arg8: memref<2x20x32x128xbf16, #tpu.memory_space<vmem>>, %arg9: memref<128x1152xbf16, #tpu.memory_space<vmem>>, %arg10: memref<2x!tpu.dma_semaphore, #tpu.memory_space<semaphore_mem>>) attributes {dimension_semantics = [#tpu.dimension_semantics<parallel>, #tpu.dimension_semantics<parallel>, #tpu.dimension_semantics<parallel>], iteration_bounds = array<i64: 2, 1, 2>, scalar_prefetch = 0 : i64, scratch_operands = 3 : i64, tpu.core_type = #tpu.core_type<tc>, window_params = [{}, {transform_indices = @transform_1, window_bounds = array<i64: 1152, 128>}, {transform_indices = @transform_2, window_bounds = array<i64: 1, 128>}, {transform_indices = @transform_3, window_bounds = array<i64: 1, 128>}, {transform_indices = @transform_4, window_bounds = array<i64: 1, 128, 128>}]} {
    %c1_i32 = arith.constant 1 : i32
    %0 = arith.muli %arg2, %c1_i32 : i32
    %c28_i32 = arith.constant 28 : i32
    %1 = arith.muli %arg0, %c28_i32 : i32
    %c0_i32 = arith.constant 0 : i32
    %2 = arith.addi %0, %c0_i32 : i32
    %c8_i32 = arith.constant 8 : i32
    %3 = arith.muli %2, %c8_i32 : i32
    %4 = arith.addi %1, %3 : i32
    %c0_i32_0 = arith.constant 0 : i32
    %c0_i32_1 = arith.constant 0 : i32
    %c0_i32_2 = arith.constant 0 : i32
    %c0_i32_3 = arith.constant 0 : i32
    %5 = tpu.memref_slice %arg3[%4, %c0_i32_2, %c0_i32_3] : memref<56x32x128xbf16, #tpu.memory_space<any>> -> memref<20x32x128xbf16, #tpu.memory_space<any>>
    %c0_i32_4 = arith.constant 0 : i32
    %c0_i32_5 = arith.constant 0 : i32
    %c0_i32_6 = arith.constant 0 : i32
    %6 = tpu.memref_slice %arg8[%c0_i32_0, %c0_i32_4, %c0_i32_5, %c0_i32_6] : memref<2x20x32x128xbf16, #tpu.memory_space<vmem>> -> memref<1x20x32x128xbf16, #tpu.memory_space<vmem>>
    %7 = tpu.memref_squeeze %6 : memref<1x20x32x128xbf16, #tpu.memory_space<vmem>> -> memref<20x32x128xbf16, #tpu.memory_space<vmem>>
    %8 = tpu.memref_slice %arg10[%c0_i32_1] : memref<2x!tpu.dma_semaphore, #tpu.memory_space<semaphore_mem>> -> memref<1x!tpu.dma_semaphore, #tpu.memory_space<semaphore_mem>>
    %9 = tpu.memref_squeeze %8 : memref<1x!tpu.dma_semaphore, #tpu.memory_space<semaphore_mem>> -> memref<!tpu.dma_semaphore, #tpu.memory_space<semaphore_mem>>
    tpu.enqueue_dma source(%5 : memref<20x32x128xbf16, #tpu.memory_space<any>>) target(%7 : memref<20x32x128xbf16, #tpu.memory_space<vmem>>) target_semaphore(%9 : memref<!tpu.dma_semaphore, #tpu.memory_space<semaphore_mem>>)
    %c0_i32_7 = arith.constant 0 : i32
    %c1_i32_8 = arith.constant 1 : i32
    %10 = arith.muli %c0_i32_7, %c1_i32_8 : i32
    %c0_i32_9 = arith.constant 0 : i32
    %11 = arith.addi %c0_i32_9, %10 : i32
    %c2_i32 = arith.constant 2 : i32
    %c0_i32_10 = arith.constant 0 : i32
    %12 = arith.cmpi eq, %c2_i32, %c0_i32_10 : i32
    %c1_i32_11 = arith.constant 1 : i32
    %13 = arith.select %12, %c1_i32_11, %c2_i32 : i32
    %14 = arith.remsi %11, %13 : i32
    %c0_i32_12 = arith.constant 0 : i32
    %15 = arith.cmpi ne, %14, %c0_i32_12 : i32
    %c0_i32_13 = arith.constant 0 : i32
    %16 = arith.cmpi slt, %14, %c0_i32_13 : i32
    %c0_i32_14 = arith.constant 0 : i32
    %17 = arith.cmpi slt, %13, %c0_i32_14 : i32
    %18 = arith.xori %16, %17 : i1
    %19 = arith.andi %18, %15 : i1
    %20 = arith.addi %14, %13 : i32
    %21 = arith.select %19, %20, %14 : i32
    %c28_i32_15 = arith.constant 28 : i32
    %22 = arith.muli %arg0, %c28_i32_15 : i32
    %23 = arith.addi %0, %11 : i32
    %c8_i32_16 = arith.constant 8 : i32
    %24 = arith.muli %23, %c8_i32_16 : i32
    %25 = arith.addi %22, %24 : i32
    %c0_i32_17 = arith.constant 0 : i32
    %c0_i32_18 = arith.constant 0 : i32
    %26 = tpu.memref_slice %arg3[%25, %c0_i32_17, %c0_i32_18] : memref<56x32x128xbf16, #tpu.memory_space<any>> -> memref<20x32x128xbf16, #tpu.memory_space<any>>
    %c0_i32_19 = arith.constant 0 : i32
    %c0_i32_20 = arith.constant 0 : i32
    %c0_i32_21 = arith.constant 0 : i32
    %27 = tpu.memref_slice %arg8[%21, %c0_i32_19, %c0_i32_20, %c0_i32_21] : memref<2x20x32x128xbf16, #tpu.memory_space<vmem>> -> memref<1x20x32x128xbf16, #tpu.memory_space<vmem>>
    %28 = tpu.memref_squeeze %27 : memref<1x20x32x128xbf16, #tpu.memory_space<vmem>> -> memref<20x32x128xbf16, #tpu.memory_space<vmem>>
    %29 = tpu.memref_slice %arg10[%21] : memref<2x!tpu.dma_semaphore, #tpu.memory_space<semaphore_mem>> -> memref<1x!tpu.dma_semaphore, #tpu.memory_space<semaphore_mem>>
    %30 = tpu.memref_squeeze %29 : memref<1x!tpu.dma_semaphore, #tpu.memory_space<semaphore_mem>> -> memref<!tpu.dma_semaphore, #tpu.memory_space<semaphore_mem>>
    tpu.wait_dma2 semaphore(%30 : memref<!tpu.dma_semaphore, #tpu.memory_space<semaphore_mem>>) src(%26 : memref<20x32x128xbf16, #tpu.memory_space<any>>) dst(%28 : memref<20x32x128xbf16, #tpu.memory_space<vmem>>)
    %c1_i32_22 = arith.constant 1 : i32
    %31 = arith.addi %11, %c1_i32_22 : i32
    %c1_i32_23 = arith.constant 1 : i32
    %32 = arith.cmpi slt, %31, %c1_i32_23 : i32
    %33 = arith.extui %32 : i1 to i32
    %c0_i32_24 = arith.constant 0 : i32
    %34 = arith.cmpi ne, %33, %c0_i32_24 : i32
    scf.if %34 {
      %c1_i32_98 = arith.constant 1 : i32
      %101 = arith.addi %11, %c1_i32_98 : i32
      %c1_i32_99 = arith.constant 1 : i32
      %102 = arith.subi %c1_i32_99, %21 : i32
      %c28_i32_100 = arith.constant 28 : i32
      %103 = arith.muli %arg0, %c28_i32_100 : i32
      %104 = arith.addi %0, %101 : i32
      %c8_i32_101 = arith.constant 8 : i32
      %105 = arith.muli %104, %c8_i32_101 : i32
      %106 = arith.addi %103, %105 : i32
      %c0_i32_102 = arith.constant 0 : i32
      %c0_i32_103 = arith.constant 0 : i32
      %107 = tpu.memref_slice %arg3[%106, %c0_i32_102, %c0_i32_103] : memref<56x32x128xbf16, #tpu.memory_space<any>> -> memref<20x32x128xbf16, #tpu.memory_space<any>>
      %c0_i32_104 = arith.constant 0 : i32
      %c0_i32_105 = arith.constant 0 : i32
      %c0_i32_106 = arith.constant 0 : i32
      %108 = tpu.memref_slice %arg8[%102, %c0_i32_104, %c0_i32_105, %c0_i32_106] : memref<2x20x32x128xbf16, #tpu.memory_space<vmem>> -> memref<1x20x32x128xbf16, #tpu.memory_space<vmem>>
      %109 = tpu.memref_squeeze %108 : memref<1x20x32x128xbf16, #tpu.memory_space<vmem>> -> memref<20x32x128xbf16, #tpu.memory_space<vmem>>
      %110 = tpu.memref_slice %arg10[%102] : memref<2x!tpu.dma_semaphore, #tpu.memory_space<semaphore_mem>> -> memref<1x!tpu.dma_semaphore, #tpu.memory_space<semaphore_mem>>
      %111 = tpu.memref_squeeze %110 : memref<1x!tpu.dma_semaphore, #tpu.memory_space<semaphore_mem>> -> memref<!tpu.dma_semaphore, #tpu.memory_space<semaphore_mem>>
      tpu.enqueue_dma source(%107 : memref<20x32x128xbf16, #tpu.memory_space<any>>) target(%109 : memref<20x32x128xbf16, #tpu.memory_space<vmem>>) target_semaphore(%111 : memref<!tpu.dma_semaphore, #tpu.memory_space<semaphore_mem>>)
    } else {
    }
    %c0_i32_25 = arith.constant 0 : i32
    %c0_i32_26 = arith.constant 0 : i32
    %c0_i32_27 = arith.constant 0 : i32
    %35 = tpu.memref_slice %arg8[%21, %c0_i32_25, %c0_i32_26, %c0_i32_27] : memref<2x20x32x128xbf16, #tpu.memory_space<vmem>> -> memref<1x20x32x128xbf16, #tpu.memory_space<vmem>>
    %36 = tpu.memref_squeeze %35 : memref<1x20x32x128xbf16, #tpu.memory_space<vmem>> -> memref<20x32x128xbf16, #tpu.memory_space<vmem>>
    %c0 = arith.constant 0 : index
    %c0_28 = arith.constant 0 : index
    %c0_29 = arith.constant 0 : index
    %37 = vector.load %36[%c0, %c0_28, %c0_29] : memref<20x32x128xbf16, #tpu.memory_space<vmem>>, vector<8x16x128xbf16>
    %38 = vector.shape_cast %37 : vector<8x16x128xbf16> to vector<128x128xbf16>
    %c0_30 = arith.constant 0 : index
    %c0_31 = arith.constant 0 : index
    %39 = vector.load %arg9[%c0_30, %c0_31] : memref<128x1152xbf16, #tpu.memory_space<vmem>>, vector<128x128xbf16>
    tpu.vector_store %arg9[%c0_30, %c0_31], %38 {strides = array<i32>} : memref<128x1152xbf16, #tpu.memory_space<vmem>>, vector<128x128xbf16>,
    %c0_i32_32 = arith.constant 0 : i32
    %c0_i32_33 = arith.constant 0 : i32
    %c0_i32_34 = arith.constant 0 : i32
    %40 = tpu.memref_slice %arg8[%21, %c0_i32_32, %c0_i32_33, %c0_i32_34] : memref<2x20x32x128xbf16, #tpu.memory_space<vmem>> -> memref<1x20x32x128xbf16, #tpu.memory_space<vmem>>
    %41 = tpu.memref_squeeze %40 : memref<1x20x32x128xbf16, #tpu.memory_space<vmem>> -> memref<20x32x128xbf16, #tpu.memory_space<vmem>>
    %c0_35 = arith.constant 0 : index
    %c6 = arith.constant 6 : index
    %c0_36 = arith.constant 0 : index
    %42 = vector.load %41[%c0_35, %c6, %c0_36] : memref<20x32x128xbf16, #tpu.memory_space<vmem>>, vector<8x16x128xbf16>
    %43 = vector.shape_cast %42 : vector<8x16x128xbf16> to vector<128x128xbf16>
    %c0_37 = arith.constant 0 : index
    %c128 = arith.constant 128 : index
    %44 = vector.load %arg9[%c0_37, %c128] : memref<128x1152xbf16, #tpu.memory_space<vmem>>, vector<128x128xbf16>
    tpu.vector_store %arg9[%c0_37, %c128], %43 {strides = array<i32>} : memref<128x1152xbf16, #tpu.memory_space<vmem>>, vector<128x128xbf16>,
    %c0_i32_38 = arith.constant 0 : i32
    %c0_i32_39 = arith.constant 0 : i32
    %c0_i32_40 = arith.constant 0 : i32
    %45 = tpu.memref_slice %arg8[%21, %c0_i32_38, %c0_i32_39, %c0_i32_40] : memref<2x20x32x128xbf16, #tpu.memory_space<vmem>> -> memref<1x20x32x128xbf16, #tpu.memory_space<vmem>>
    %46 = tpu.memref_squeeze %45 : memref<1x20x32x128xbf16, #tpu.memory_space<vmem>> -> memref<20x32x128xbf16, #tpu.memory_space<vmem>>
    %c0_41 = arith.constant 0 : index
    %c12 = arith.constant 12 : index
    %c0_42 = arith.constant 0 : index
    %47 = vector.load %46[%c0_41, %c12, %c0_42] : memref<20x32x128xbf16, #tpu.memory_space<vmem>>, vector<8x16x128xbf16>
    %48 = vector.shape_cast %47 : vector<8x16x128xbf16> to vector<128x128xbf16>
    %c0_43 = arith.constant 0 : index
    %c256 = arith.constant 256 : index
    %49 = vector.load %arg9[%c0_43, %c256] : memref<128x1152xbf16, #tpu.memory_space<vmem>>, vector<128x128xbf16>
    tpu.vector_store %arg9[%c0_43, %c256], %48 {strides = array<i32>} : memref<128x1152xbf16, #tpu.memory_space<vmem>>, vector<128x128xbf16>,
    %c0_i32_44 = arith.constant 0 : i32
    %c0_i32_45 = arith.constant 0 : i32
    %c0_i32_46 = arith.constant 0 : i32
    %50 = tpu.memref_slice %arg8[%21, %c0_i32_44, %c0_i32_45, %c0_i32_46] : memref<2x20x32x128xbf16, #tpu.memory_space<vmem>> -> memref<1x20x32x128xbf16, #tpu.memory_space<vmem>>
    %51 = tpu.memref_squeeze %50 : memref<1x20x32x128xbf16, #tpu.memory_space<vmem>> -> memref<20x32x128xbf16, #tpu.memory_space<vmem>>
    %c6_47 = arith.constant 6 : index
    %c0_48 = arith.constant 0 : index
    %c0_49 = arith.constant 0 : index
    %52 = vector.load %51[%c6_47, %c0_48, %c0_49] : memref<20x32x128xbf16, #tpu.memory_space<vmem>>, vector<8x16x128xbf16>
    %53 = vector.shape_cast %52 : vector<8x16x128xbf16> to vector<128x128xbf16>
    %c0_50 = arith.constant 0 : index
    %c384 = arith.constant 384 : index
    %54 = vector.load %arg9[%c0_50, %c384] : memref<128x1152xbf16, #tpu.memory_space<vmem>>, vector<128x128xbf16>
    tpu.vector_store %arg9[%c0_50, %c384], %53 {strides = array<i32>} : memref<128x1152xbf16, #tpu.memory_space<vmem>>, vector<128x128xbf16>,
    %c0_i32_51 = arith.constant 0 : i32
    %c0_i32_52 = arith.constant 0 : i32
    %c0_i32_53 = arith.constant 0 : i32
    %55 = tpu.memref_slice %arg8[%21, %c0_i32_51, %c0_i32_52, %c0_i32_53] : memref<2x20x32x128xbf16, #tpu.memory_space<vmem>> -> memref<1x20x32x128xbf16, #tpu.memory_space<vmem>>
    %56 = tpu.memref_squeeze %55 : memref<1x20x32x128xbf16, #tpu.memory_space<vmem>> -> memref<20x32x128xbf16, #tpu.memory_space<vmem>>
    %c6_54 = arith.constant 6 : index
    %c6_55 = arith.constant 6 : index
    %c0_56 = arith.constant 0 : index
    %57 = vector.load %56[%c6_54, %c6_55, %c0_56] : memref<20x32x128xbf16, #tpu.memory_space<vmem>>, vector<8x16x128xbf16>
    %58 = vector.shape_cast %57 : vector<8x16x128xbf16> to vector<128x128xbf16>
    %c0_57 = arith.constant 0 : index
    %c512 = arith.constant 512 : index
    %59 = vector.load %arg9[%c0_57, %c512] : memref<128x1152xbf16, #tpu.memory_space<vmem>>, vector<128x128xbf16>
    tpu.vector_store %arg9[%c0_57, %c512], %58 {strides = array<i32>} : memref<128x1152xbf16, #tpu.memory_space<vmem>>, vector<128x128xbf16>,
    %c0_i32_58 = arith.constant 0 : i32
    %c0_i32_59 = arith.constant 0 : i32
    %c0_i32_60 = arith.constant 0 : i32
    %60 = tpu.memref_slice %arg8[%21, %c0_i32_58, %c0_i32_59, %c0_i32_60] : memref<2x20x32x128xbf16, #tpu.memory_space<vmem>> -> memref<1x20x32x128xbf16, #tpu.memory_space<vmem>>
    %61 = tpu.memref_squeeze %60 : memref<1x20x32x128xbf16, #tpu.memory_space<vmem>> -> memref<20x32x128xbf16, #tpu.memory_space<vmem>>
    %c6_61 = arith.constant 6 : index
    %c12_62 = arith.constant 12 : index
    %c0_63 = arith.constant 0 : index
    %62 = vector.load %61[%c6_61, %c12_62, %c0_63] : memref<20x32x128xbf16, #tpu.memory_space<vmem>>, vector<8x16x128xbf16>
    %63 = vector.shape_cast %62 : vector<8x16x128xbf16> to vector<128x128xbf16>
    %c0_64 = arith.constant 0 : index
    %c640 = arith.constant 640 : index
    %64 = vector.load %arg9[%c0_64, %c640] : memref<128x1152xbf16, #tpu.memory_space<vmem>>, vector<128x128xbf16>
    tpu.vector_store %arg9[%c0_64, %c640], %63 {strides = array<i32>} : memref<128x1152xbf16, #tpu.memory_space<vmem>>, vector<128x128xbf16>,
    %c0_i32_65 = arith.constant 0 : i32
    %c0_i32_66 = arith.constant 0 : i32
    %c0_i32_67 = arith.constant 0 : i32
    %65 = tpu.memref_slice %arg8[%21, %c0_i32_65, %c0_i32_66, %c0_i32_67] : memref<2x20x32x128xbf16, #tpu.memory_space<vmem>> -> memref<1x20x32x128xbf16, #tpu.memory_space<vmem>>
    %66 = tpu.memref_squeeze %65 : memref<1x20x32x128xbf16, #tpu.memory_space<vmem>> -> memref<20x32x128xbf16, #tpu.memory_space<vmem>>
    %c12_68 = arith.constant 12 : index
    %c0_69 = arith.constant 0 : index
    %c0_70 = arith.constant 0 : index
    %67 = vector.load %66[%c12_68, %c0_69, %c0_70] : memref<20x32x128xbf16, #tpu.memory_space<vmem>>, vector<8x16x128xbf16>
    %68 = vector.shape_cast %67 : vector<8x16x128xbf16> to vector<128x128xbf16>
    %c0_71 = arith.constant 0 : index
    %c768 = arith.constant 768 : index
    %69 = vector.load %arg9[%c0_71, %c768] : memref<128x1152xbf16, #tpu.memory_space<vmem>>, vector<128x128xbf16>
    tpu.vector_store %arg9[%c0_71, %c768], %68 {strides = array<i32>} : memref<128x1152xbf16, #tpu.memory_space<vmem>>, vector<128x128xbf16>,
    %c0_i32_72 = arith.constant 0 : i32
    %c0_i32_73 = arith.constant 0 : i32
    %c0_i32_74 = arith.constant 0 : i32
    %70 = tpu.memref_slice %arg8[%21, %c0_i32_72, %c0_i32_73, %c0_i32_74] : memref<2x20x32x128xbf16, #tpu.memory_space<vmem>> -> memref<1x20x32x128xbf16, #tpu.memory_space<vmem>>
    %71 = tpu.memref_squeeze %70 : memref<1x20x32x128xbf16, #tpu.memory_space<vmem>> -> memref<20x32x128xbf16, #tpu.memory_space<vmem>>
    %c12_75 = arith.constant 12 : index
    %c6_76 = arith.constant 6 : index
    %c0_77 = arith.constant 0 : index
    %72 = vector.load %71[%c12_75, %c6_76, %c0_77] : memref<20x32x128xbf16, #tpu.memory_space<vmem>>, vector<8x16x128xbf16>
    %73 = vector.shape_cast %72 : vector<8x16x128xbf16> to vector<128x128xbf16>
    %c0_78 = arith.constant 0 : index
    %c896 = arith.constant 896 : index
    %74 = vector.load %arg9[%c0_78, %c896] : memref<128x1152xbf16, #tpu.memory_space<vmem>>, vector<128x128xbf16>
    tpu.vector_store %arg9[%c0_78, %c896], %73 {strides = array<i32>} : memref<128x1152xbf16, #tpu.memory_space<vmem>>, vector<128x128xbf16>,
    %c0_i32_79 = arith.constant 0 : i32
    %c0_i32_80 = arith.constant 0 : i32
    %c0_i32_81 = arith.constant 0 : i32
    %75 = tpu.memref_slice %arg8[%21, %c0_i32_79, %c0_i32_80, %c0_i32_81] : memref<2x20x32x128xbf16, #tpu.memory_space<vmem>> -> memref<1x20x32x128xbf16, #tpu.memory_space<vmem>>
    %76 = tpu.memref_squeeze %75 : memref<1x20x32x128xbf16, #tpu.memory_space<vmem>> -> memref<20x32x128xbf16, #tpu.memory_space<vmem>>
    %c12_82 = arith.constant 12 : index
    %c12_83 = arith.constant 12 : index
    %c0_84 = arith.constant 0 : index
    %77 = vector.load %76[%c12_82, %c12_83, %c0_84] : memref<20x32x128xbf16, #tpu.memory_space<vmem>>, vector<8x16x128xbf16>
    %78 = vector.shape_cast %77 : vector<8x16x128xbf16> to vector<128x128xbf16>
    %c0_85 = arith.constant 0 : index
    %c1024 = arith.constant 1024 : index
    %79 = vector.load %arg9[%c0_85, %c1024] : memref<128x1152xbf16, #tpu.memory_space<vmem>>, vector<128x128xbf16>
    tpu.vector_store %arg9[%c0_85, %c1024], %78 {strides = array<i32>} : memref<128x1152xbf16, #tpu.memory_space<vmem>>, vector<128x128xbf16>,
    %c0_86 = arith.constant 0 : index
    %c0_87 = arith.constant 0 : index
    %80 = vector.load %arg9[%c0_86, %c0_87] : memref<128x1152xbf16, #tpu.memory_space<vmem>>, vector<128x1152xbf16>
    %c0_88 = arith.constant 0 : index
    %c0_89 = arith.constant 0 : index
    %81 = vector.load %arg4[%c0_88, %c0_89] : memref<1152x128xbf16, #tpu.memory_space<vmem>>, vector<1152x128xbf16>
    %cst = arith.constant dense<0.000000e+00> : vector<128x128xf32>
    %82 = tpu.matmul %80, %81, %cst {dimension_numbers = #tpu.dot_dimension_numbers<[1], [0], [0], [1], [0, 0, 1, 1], [], []>} : vector<128x1152xbf16>, vector<1152x128xbf16>, vector<128x128xf32> -> vector<128x128xf32>
    %c0_90 = arith.constant 0 : index
    %c0_91 = arith.constant 0 : index
    %83 = vector.load %arg5[%c0_90, %c0_91] : memref<1x128xf32, #tpu.memory_space<vmem>>, vector<1x128xf32>
    %84 = vector.shape_cast %83 : vector<1x128xf32> to vector<128xf32>
    %85 = vector.shape_cast %84 : vector<128xf32> to vector<1x128xf32>
    %86 = vector.broadcast %85 : vector<1x128xf32> to vector<128x128xf32>
    %87 = arith.mulf %82, %86 : vector<128x128xf32>
    %c0_92 = arith.constant 0 : index
    %c0_93 = arith.constant 0 : index
    %88 = vector.load %arg6[%c0_92, %c0_93] : memref<1x128xf32, #tpu.memory_space<vmem>>, vector<1x128xf32>
    %89 = vector.shape_cast %88 : vector<1x128xf32> to vector<128xf32>
    %90 = vector.shape_cast %89 : vector<128xf32> to vector<1x128xf32>
    %91 = vector.broadcast %90 : vector<1x128xf32> to vector<128x128xf32>
    %92 = arith.addf %87, %91 : vector<128x128xf32>
    %cst_94 = arith.constant 0.000000e+00 : f32
    %93 = vector.broadcast %cst_94 : f32 to vector<128x128xf32>
    %94 = arith.maximumf %92, %93 : vector<128x128xf32>
    %c128_i32 = arith.constant 128 : i32
    %95 = arith.muli %11, %c128_i32 : i32
    %96 = tpu.assume_multiple %95, 8 : i32
    %c0_95 = arith.constant 0 : index
    %97 = arith.index_cast %96 : i32 to index
    %c0_96 = arith.constant 0 : index
    %98 = vector.load %arg7[%c0_95, %97, %c0_96] : memref<1x128x128xf32, #tpu.memory_space<vmem>>, vector<1x128x128xf32>
    %99 = vector.shape_cast %98 : vector<1x128x128xf32> to vector<128x128xf32>
    %100 = vector.shape_cast %94 : vector<128x128xf32> to vector<1x128x128xf32>
    tpu.vector_store %arg7[%c0_95, %97, %c0_96], %100 {strides = array<i32>} : memref<1x128x128xf32, #tpu.memory_space<vmem>>, vector<1x128x128xf32>,
    %c1_i32_97 = arith.constant 1 : i32
    return
  }
  func.func @transform_1(%arg0: i32, %arg1: i32, %arg2: i32) -> (i32, i32) {
    %c0_i32 = arith.constant 0 : i32
    %c0_i32_0 = arith.constant 0 : i32
    return %c0_i32, %arg1 : i32, i32
  }
  func.func @transform_2(%arg0: i32, %arg1: i32, %arg2: i32) -> (i32, i32) {
    %c0_i32 = arith.constant 0 : i32
    %c0_i32_0 = arith.constant 0 : i32
    return %c0_i32, %arg1 : i32, i32
  }
  func.func @transform_3(%arg0: i32, %arg1: i32, %arg2: i32) -> (i32, i32) {
    %c0_i32 = arith.constant 0 : i32
    %c0_i32_0 = arith.constant 0 : i32
    return %c0_i32, %arg1 : i32, i32
  }
  func.func @transform_4(%arg0: i32, %arg1: i32, %arg2: i32) -> (i32, i32, i32) {
    %c0_i32 = arith.constant 0 : i32
    return %arg0, %arg2, %arg1 : i32, i32, i32
  }
}

</mosaic_0001>

<bundles_post_ra>
// kernel: tpu_custom_call.1
= control target key start
LH: loop header
LB: loop body
LE: loop exit
PB: predicated region body
PF: predicated region fallthrough
CT: control target
= control target key end

     0   :  { %s4447_s0 = inlined_call_operand.hbm [shape: bf16[56,32,128], index: 0, kind: input, shape index: {}]   ;;  %s4448_s1 = inlined_call_operand.hbm [shape: bf16[1152,128], index: 1, kind: input, shape index: {}]   ;;  %s4449_s2 = inlined_call_operand.vmem [shape: f32[1,128], index: 2, kind: input, shape index: {}]   ;;  %s4450_s3 = inlined_call_operand.vmem [shape: f32[1,128], index: 3, kind: input, shape index: {}]   ;;  %s4451_s4 = inlined_call_operand.hbm [shape: f32[2,256,128], index: 4, kind: output, shape index: {}]  }
   0x1   :  { %4456 = sst [smem:[#allocation19_spill]] %s4448_s1 }
   0x2   :  { %9 = vsyncpa [#allocation6], 0 }
   0x3   :  { %10 = vsyncpa [#allocation7], 0 }
   0x4   :  { %12 = vsyncpa [#allocation7 + $0x1], 0  ;;  %s3939_s15 = smov 0   ;;  %s3941_s16 = smov 0  }
   0x5   :  { %s3943_s17 = smov 0   ;;  %s3945_s18 = smov 0  }
   0x6   :  { %s3947_s19 = smov 0   ;;  %s3949_s20 = smov 0  }
   0x7   :  { %s3951_s21 = smov 0   ;;  %s3953_s22 = smov 0  }
   0x8 LB: > { %4457 = sst [smem:[#allocation16_spill]] %s3902_s21  ;;  %s2850_s23 = sadd.s32 4294967295, %s3906_s22   ;;  %s3906_s22 = sphi %s3953_s22, %s18_s22   ;;  %s3902_s21 = sphi %s3951_s21, %s4472_s21   ;;  %s3898_s20 = sphi %s3949_s20, %s4477_s20   ;;  %s3894_s19 = sphi %s3947_s19, %s4470_s19   ;;  %s3890_s18 = sphi %s3945_s18, %s4476_s18   ;;  %s3886_s17 = sphi %s3943_s17, %s4475_s17   ;;  %s3882_s16 = sphi %s3941_s16, %s4474_s16   ;;  %s3878_s15 = sphi %s3939_s15, %s4473_s15  }
   0x9   : > { %s2851_s24 = sadd.s32 4294967294, %s3906_s22   ;;  %s30_s25 = sadd.s32 1, %s3898_s20 }
   0xa   : > { %s37_s26 = sadd.s32 1, %s3902_s21  ;;  %p31_p0 = scmp.ge.s32.totalorder %s30_s25, 2 }
   0xb   : > { %s126_s27 = sadd.s32 1, %s3886_s17  ;;  %p136_p1 = scmp.ne.s32.totalorder %s3886_s17, %s3882_s16 }
   0xc   : > { %p137_p2 = scmp.eq.s32.totalorder %s2850_s23, 3  ;;  %s4479_s25 = smov (%p31_p0, %s30_s25), 0 }
   0xd   : > { %4458 = sst [smem:[#allocation17_spill]] %s4479_s25  ;;  %s4481_s26 = smov (!%p31_p0, %s37_s26), %s3902_s21 }
   0xe   : > { %s120_s28 = ssub.s32 %s3898_s20, %s4479_s25  ;;  %p3991_p3 = por %p137_p2, %p136_p1 }
   0xf   : > { %p39_p4 = scmp.ge.s32.totalorder %s4481_s26, 2  ;;  %p142_p5 = scmp.ne.s32.totalorder %s3882_s16, %s3878_s15 }
  0x10   : > { %p143_p6 = scmp.eq.s32.totalorder %s2851_s24, 3  ;;  %p2852_p7 = scmp.ge.s32.totalorder %s3906_s22, 1 }
  0x11   : > { %s4483_s26 = smov (%p39_p4, %s4481_s26), 0  ;;  %p150_p9 = scmp.lt.s32.totalorder %s3906_s22, 5 }
  0x12   : > { %4460 = sst [smem:[#allocation18_spill]] %s4483_s26  ;;  %p4000_p8 = por %p143_p6, %p142_p5 }
  0x13   : > { %s119_s5 = ssub.s32 %s3902_s21, %s4483_s26  ;;  %p4007_p10 = pnand %p2852_p7, %p150_p9 }
  0x14   : > { %s121_s6 = sor.u32 %s120_s28, %s119_s5  ;;  %p4011_p12 = scmp.eq.s32.totalorder %s2850_s23, 0 }
  0x15   : > { %p124_p11 = scmp.eq.s32.totalorder %s121_s6, 0  ;;  %p3669_p13 = pneg %p4007_p10 }
  0x16   : > { %s4464_s1 = sld [smem:[#allocation19_spill]]  ;;  %s3908_s13 = smov [#allocation5]  }
  0x17   : > { %s4021_s12 = scalar_select %p124_p11, %s3886_s17, %s126_s27  }
  0x18   : > { %s165_s14 = sshll.u32 %s3908_s13, 4  ;;  %p3670_p0 = pnand %p4011_p12, %p3669_p13  ;;  %s166_s14 = int_to_ptr.vmem [resolvable:$true] %s165_s14 }
  0x19   : > { %s3909_s24 = smov 64   ;;  %s3910_s23 = smov 4  }
  0x1a   : > { %193 = sbr.rel (%p4007_p10) target bundleno = 510 (0x1fe), region = 32 }
  0x1c   : > { %s163_s11 = sshll.u32 %s4464_s1, 4  ;;  %s164_s11 = int_to_ptr.hbm [resolvable:$true] %s163_s11 }
  0x1d   : > { %3672 = dma.hbm_to_vmem [thread:$0]  (!%p3670_p0), %s164_s11, 9216, %s166_s14, [#allocation6], %s3909_s24, %s3909_s24, %s3910_s23  }
  0x1f   : > { %3867 = dma.done.wait (%p4011_p12), [#allocation6], 9216  }
  0x20   : > { %3869 = vsyncadd (%p4011_p12), [#allocation6], 4294958080  ;;  %s4454_s27 = sand.u32 1, %s3882_s16   ;;  %s226_s28 = smul.u32 28, %s3894_s19 }
  0x21   : > { %s2858_s5 = sshll.u32 %s4454_s27, 7  ;;  %s2859_s6 = sshll.u32 %s3890_s18, 3 }
  0x22   : > { %s228_s9 = sadd.s32 %s2859_s6, %s226_s28  ;;  %s3911_s14 = smov [#allocation2]  }
  0x23   : > { %s3494_s10 = sshll.u32 %s228_s9, 4  ;;  %s241_s24 = sshll.u32 %s3911_s14, 4  ;;  %s242_s24 = int_to_ptr.vmem [resolvable:$true] %s241_s24 }
  0x24   : > { %s231_s13 = scalar_lea.hbm %s4447_s0, %s3494_s10  ;;  %s3786_s27 = scalar_lea.hbm %s4447_s0, 896 }
  0x25   : > { %s239_s23 = sshll.u32 %s231_s13, 4  ;;  %s240_s23 = int_to_ptr.hbm [resolvable:$true] %s239_s23 }
  0x26   : > { %s3782_s8 = sshra.s32 %s240_s23, 4  ;;  %s3783_s8 = int_to_ptr.hbm [resolvable:$true] %s3782_s8 }
  0x27   : > { %s3784_s1 = scalar_lea.hbm %s3783_s8, 320  ;;  %p3787_p2 = scmp.lt.s32.totalorder %s3783_s8, %s4447_s0 }
  0x28   : > { %p3785_p1 = scmp.ne.s32.totalorder %s3783_s8, %s3784_s1  ;;  %p3788_p4 = scmp.lt.s32.totalorder %s3786_s27, %s3784_s1 }
  0x2a   : > { %p3789_p5 = por %p3788_p4, %p3787_p2 }
  0x2c   : > { %p3790_p6 = pnand %p3789_p5, %p3785_p1 }
  0x2e   : > { %3793 = shalt.err (!%p3790_p6)  }
  0x2f   : > { %244 = dma.hbm_to_vmem [thread:$0]  %s240_s23, 5120, %s242_s24, [#allocation4] }
  0x30   : > { %s4045_s6 = scalar_lea.vmem [#allocation8], %s2858_s5 }
  0x31   : > { %3870 = dma.done.wait [#allocation4], 5120 }
  0x32   : > { %3871 = vsyncadd [#allocation4], 4294962176  ;;  %v3574_v0 = vld [vmem:[#allocation5 + $0x38] sm:$0xff]  ;;  %v3573_v1 = vld [vmem:[#allocation5 + $0x30] sm:$0xff]  ;;  %vm330_vm0 = vcmask 1040384   ;;  %vm331_vm1 = vcmask 1044484  }
  0x33   : > { %3639 = vmatpush.bf16.msra.mxu1 %v3574_v0  ;;  %3640 = vmatpush.bf16.msra.mxu2 %v3574_v0  ;;  %v254_v2 = vld [vmem:[#allocation2 + $0x20] sm:$0xf]  ;;  %v255_v3 = vld [vmem:[#allocation2 + $0x24] sm:$0xf]  ;;  %v3572_v8 = vld [vmem:[#allocation5 + $0x28] sm:$0xff]  ;;  %vm469_vm3 = vcmask 1041408  }
  0x34   : > { %3641 = vmatpush.bf16.msra.mxu3 %v3574_v0  ;;  %2194 = vmatpush.bf16.msra.mxu0 %v3574_v0  ;;  %270 = vst [vmem:[#allocation3 + $0x90] sm:$0xf] %v254_v2  ;;  %v258_v4 = vld [vmem:[#allocation2 + $0x40] sm:$0xf]  ;;  %v259_v5 = vld [vmem:[#allocation2 + $0x44] sm:$0xf]  ;;  %vm4047_vm2 = vmor %vm330_vm0, %vm331_vm1 }
  0x35   : > { %271 = vst [vmem:[#allocation3 + $0xb4] sm:$0xf] %v255_v3  ;;  %v262_v6 = vld [vmem:[#allocation2 + $0x60] sm:$0xf]  ;;  %v263_v7 = vld [vmem:[#allocation2 + $0x64] sm:$0xf] }
  0x36   : > { %274 = vst [vmem:[#allocation3 + $0x120] sm:$0xf] %v258_v4  ;;  %v250_v9 = vld [vmem:[#allocation2] sm:$0xf]  ;;  %v251_v10 = vld [vmem:[#allocation2 + $0x4] sm:$0xf] }
  0x37   : > { %3642 = vmatpush.bf16.msra.mxu1 %v3573_v1  ;;  %3643 = vmatpush.bf16.msra.mxu2 %v3573_v1  ;;  %275 = vst [vmem:[#allocation3 + $0x144] sm:$0xf] %v259_v5  ;;  %v256_v11 = vld [vmem:[#allocation2 + $0x30] sm:$0xf]  ;;  %v3571_v12 = vld [vmem:[#allocation5 + $0x20] sm:$0xff]  ;;  %v3570_v16 = vld [vmem:[#allocation5 + $0x18] sm:$0xff] }
  0x38   : > { %3644 = vmatpush.bf16.msra.mxu3 %v3573_v1  ;;  %2195 = vmatpush.bf16.msra.mxu0 %v3573_v1  ;;  %278 = vst [vmem:[#allocation3 + $0x1b0] sm:$0xf] %v262_v6  ;;  %v257_v13 = vld [vmem:[#allocation2 + $0x34] sm:$0xf]  ;;  %v260_v14 = vld [vmem:[#allocation2 + $0x50] sm:$0xf] }
  0x39   : > { %279 = vst [vmem:[#allocation3 + $0x1d4] sm:$0xf] %v263_v7  ;;  %v261_v15 = vld [vmem:[#allocation2 + $0x54] sm:$0xf]  ;;  %v264_v17 = vld [vmem:[#allocation2 + $0x70] sm:$0xf] }
  0x3a   : > { %266 = vst [vmem:[#allocation3] sm:$0xf] %v250_v9  ;;  %v265_v18 = vld [vmem:[#allocation2 + $0x74] sm:$0xf]  ;;  %v252_v20 = vld [vmem:[#allocation2 + $0x10] sm:$0xf] }
  0x3b   : > { %3645 = vmatpush.bf16.msra.mxu1 %v3572_v8  ;;  %3646 = vmatpush.bf16.msra.mxu2 %v3572_v8  ;;  %267 = vst [vmem:[#allocation3 + $0x24] sm:$0xf] %v251_v10  ;;  %v3569_v19 = vld [vmem:[#allocation5 + $0x10] sm:$0xff]  ;;  %v282_v22 = vld [vmem:[#allocation2] sm:$0x8]  ;;  %v3568_v23 = vld [vmem:[#allocation5 + $0x8] sm:$0xff] }
  0x3c   : > { %3647 = vmatpush.bf16.msra.mxu3 %v3572_v8  ;;  %2196 = vmatpush.bf16.msra.mxu0 %v3572_v8  ;;  %272 = vst [vmem:[#allocation3 + $0xd8] sm:$0xf] %v256_v11  ;;  %v253_v21 = vld [vmem:[#allocation2 + $0x14] sm:$0xf]  ;;  %v283_v24 = vld [vmem:[#allocation2 + $0x4] sm:$0xf] }
  0x3d   : > { %273 = vst [vmem:[#allocation3 + $0xfc] sm:$0xf] %v257_v13  ;;  %v284_v25 = vld [vmem:[#allocation2 + $0x8] sm:$0x7]  ;;  %v2862_v26 = vrot.slane %v282_v22, 11  ;;  %v3567_v27 = vld [vmem:[#allocation5] sm:$0xff] }
  0x3e   : > { %276 = vst [vmem:[#allocation3 + $0x168] sm:$0xf] %v260_v14  ;;  %v2984_v28 = vld [vmem:[#allocation3 + $0x90] sm:$0xf]  ;;  %v3517_v29 = vld [vmem:[#allocation3 + $0xb0] sm:$0xf0] }
  0x3f   : > { %3648 = vmatpush.bf16.msra.mxu1 %v3571_v12  ;;  %3649 = vmatpush.bf16.msra.mxu2 %v3571_v12  ;;  %277 = vst [vmem:[#allocation3 + $0x18c] sm:$0xf] %v261_v15  ;;  %v3056_v30 = vld [vmem:[#allocation3 + $0x120] sm:$0xf]  ;;  %v3535_v31 = vld [vmem:[#allocation3 + $0x140] sm:$0xf0]  ;;  %v2985_v52 = vor.u32 %v3517_v29, %v2984_v28 }
  0x40   : > { %3650 = vmatpush.bf16.msra.mxu3 %v3571_v12  ;;  %2197 = vmatpush.bf16.msra.mxu0 %v3571_v12  ;;  %280 = vst [vmem:[#allocation3 + $0x1f8] sm:$0xf] %v264_v17  ;;  %v3128_v32 = vld [vmem:[#allocation3 + $0x1b0] sm:$0xf]  ;;  %v335_v33 = vrot.slane %v283_v24, 7  ;;  %v338_v34 = vrot.slane %v284_v25, 7  ;;  %v3057_v53 = vor.u32 %v3535_v31, %v3056_v30 }
  0x41   : > { %281 = vst [vmem:[#allocation3 + $0x21c] sm:$0xf] %v265_v18  ;;  %v421_v36 = vld [vmem:[#allocation2 + $0x4] sm:$0xc]  ;;  %v422_v37 = vld [vmem:[#allocation2 + $0x8] sm:$0xf] }
  0x42   : > { %268 = vst [vmem:[#allocation3 + $0x48] sm:$0xf] %v252_v20  ;;  %vm470_vm4 = vcmask 1045508   ;;  %v3553_v38 = vld [vmem:[#allocation3 + $0x1d0] sm:$0xf0]  ;;  %v336_v39 = vsel %vm4047_vm2, %v2862_v26, %v335_v33  ;;  %v337_v40 = vrot.slane %v335_v33, 4 }
  0x43   : > { %3651 = vmatpush.bf16.msra.mxu1 %v3570_v16  ;;  %3652 = vmatpush.bf16.msra.mxu2 %v3570_v16  ;;  %269 = vst [vmem:[#allocation3 + $0x6c] sm:$0xf] %v253_v21  ;;  %v423_v41 = vld [vmem:[#allocation2 + $0xc] sm:$0x3]  ;;  %v2870_v42 = vrot.slane %v421_v36, 10  ;;  %vm4053_vm5 = vmor %vm469_vm3, %vm470_vm4  ;;  %v3590_v46 = vld [vmem:[#allocation5 + $0xb8] sm:$0xff]  ;;  %v3129_v54 = vor.u32 %v3553_v38, %v3128_v32 }
  0x44   : > { %3653 = vmatpush.bf16.msra.mxu3 %v3570_v16  ;;  %2198 = vmatpush.bf16.msra.mxu0 %v3570_v16  ;;  %v2912_v43 = vld [vmem:[#allocation3] sm:$0xf]  ;;  %v3499_v44 = vld [vmem:[#allocation3 + $0x20] sm:$0xf0]  ;;  %405 = vst [vmem:[#allocation3 + $0x4] sm:$0xf] %v336_v39  ;;  %v339_v48 = vsel %vm4047_vm2, %v337_v40, %v338_v34 }
  0x45   : > { %v3582_v47 = vld [vmem:[#allocation5 + $0x78] sm:$0xff]  ;;  %v474_v49 = vrot.slane %v422_v37, 6  ;;  %v477_v50 = vrot.slane %v423_v41, 6  ;;  %v561_v51 = vld [vmem:[#allocation2 + $0x60] sm:$0xf]  ;;  %v2913_v59 = vor.u32 %v3499_v44, %v2912_v43  ;;  %v3589_v0 = vld [vmem:[#allocation5 + $0xb0] sm:$0xff] }
  0x46   : > { %v3598_v55 = vld [vmem:[#allocation5 + $0xf8] sm:$0xff]  ;;  %406 = vst [vmem:[#allocation3 + $0x28] sm:$0xf] %v339_v48  ;;  %v562_v57 = vld [vmem:[#allocation2 + $0x64] sm:$0xf]  ;;  %v3581_v3 = vld [vmem:[#allocation5 + $0x70] sm:$0xff] }
  0x47   : > { %3654 = vmatpush.bf16.msra.mxu1 %v3569_v19  ;;  %3655 = vmatpush.bf16.msra.mxu2 %v3569_v19  ;;  %v3606_v56 = vld [vmem:[#allocation5 + $0x138] sm:$0xff]  ;;  %v593_v58 = vld [vmem:[#allocation2 + $0x60] sm:$0x8]  ;;  %v475_v60 = vsel %vm4053_vm5, %v2870_v42, %v474_v49  ;;  %v476_v61 = vrot.slane %v474_v49, 4  ;;  %577 = vst [vmem:[#allocation3 + $0xc] sm:$0xf] %v561_v51 }
  0x48   : > { %3656 = vmatpush.bf16.msra.mxu3 %v3569_v19  ;;  %2199 = vmatpush.bf16.msra.mxu0 %v3569_v19  ;;  %v594_v62 = vld [vmem:[#allocation2 + $0x64] sm:$0xf]  ;;  %v2878_v63 = vrot.slane %v593_v58, 11  ;;  %544 = vst [vmem:[#allocation3 + $0x8] sm:$0xf] %v475_v60  ;;  %v3597_v8 = vld [vmem:[#allocation5 + $0xf0] sm:$0xff] }
  0x49   : > { %v595_v1 = vld [vmem:[#allocation2 + $0x68] sm:$0x7]  ;;  %v643_v2 = vrot.slane %v594_v62, 7  ;;  %v478_v4 = vsel %vm4053_vm5, %v476_v61, %v477_v50  ;;  %578 = vst [vmem:[#allocation3 + $0x30] sm:$0xf] %v562_v57  ;;  %v3605_v9 = vld [vmem:[#allocation5 + $0x130] sm:$0xff] }
  0x4a   : > { %v646_v5 = vrot.slane %v595_v1, 7  ;;  %545 = vst [vmem:[#allocation3 + $0x2c] sm:$0xf] %v478_v4  ;;  %v285_v11 = vld [vmem:[#allocation2 + $0x10] sm:$0x8]  ;;  %v3588_v12 = vld [vmem:[#allocation5 + $0xa8] sm:$0xff] }
  0x4b   : > { %3657 = vmatpush.bf16.msra.mxu1 %v3568_v23  ;;  %3658 = vmatpush.bf16.msra.mxu2 %v3568_v23  ;;  %v644_v6 = vsel %vm4047_vm2, %v2878_v63, %v643_v2  ;;  %v645_v7 = vrot.slane %v643_v2, 4  ;;  %v3580_v13 = vld [vmem:[#allocation5 + $0x68] sm:$0xff]  ;;  %v286_v14 = vld [vmem:[#allocation2 + $0x14] sm:$0xf]  ;;  %v287_v17 = vld [vmem:[#allocation2 + $0x18] sm:$0x7] }
  0x4c   : > { %3659 = vmatpush.bf16.msra.mxu3 %v3568_v23  ;;  %2200 = vmatpush.bf16.msra.mxu0 %v3568_v23  ;;  %713 = vst [vmem:[#allocation3 + $0x10] sm:$0xf] %v644_v6  ;;  %v3596_v15 = vld [vmem:[#allocation5 + $0xe8] sm:$0xff]  ;;  %v2863_v18 = vrot.slane %v285_v11, 11  ;;  %v342_v19 = vrot.slane %v286_v14, 7  ;;  %v3587_v20 = vld [vmem:[#allocation5 + $0xa0] sm:$0xff] }
  0x4d   : > { %v647_v10 = vsel %vm4047_vm2, %v645_v7, %v646_v5  ;;  %v3604_v16 = vld [vmem:[#allocation5 + $0x128] sm:$0xff]  ;;  %v3579_v21 = vld [vmem:[#allocation5 + $0x60] sm:$0xff]  ;;  %v345_v22 = vrot.slane %v287_v17, 7  ;;  %v424_v23 = vld [vmem:[#allocation2 + $0x14] sm:$0xc]  ;;  %s3487_s27 = sshll.u32 %s3890_s18, 4 }
  0x4e   : > { %714 = vst [vmem:[#allocation3 + $0x34] sm:$0xf] %v647_v10  ;;  %v3020_v24 = vld [vmem:[#allocation3 + $0xd8] sm:$0xf]  ;;  %v3526_v25 = vld [vmem:[#allocation3 + $0xf8] sm:$0xf0]  ;;  %v343_v26 = vsel %vm4047_vm2, %v2863_v18, %v342_v19 }
  0x4f   : > { %3660 = vmatpush.bf16.msra.mxu1 %v3567_v27  ;;  %3661 = vmatpush.bf16.msra.mxu2 %v3567_v27  ;;  %v425_v28 = vld [vmem:[#allocation2 + $0x18] sm:$0xf]  ;;  %v2871_v29 = vrot.slane %v424_v23, 10  ;;  %v3092_v30 = vld [vmem:[#allocation3 + $0x168] sm:$0xf]  ;;  %v3595_v33 = vld [vmem:[#allocation5 + $0xe0] sm:$0xff] }
  0x50   : > { %3662 = vmatpush.bf16.msra.mxu3 %v3567_v27  ;;  %2201 = vmatpush.bf16.msra.mxu0 %v3567_v27  ;;  %v344_v27 = vrot.slane %v342_v19, 4  ;;  %v3544_v31 = vld [vmem:[#allocation3 + $0x188] sm:$0xf0]  ;;  %407 = vst [vmem:[#allocation3 + $0x4c] sm:$0xf] %v343_v26  ;;  %v3603_v34 = vld [vmem:[#allocation5 + $0x120] sm:$0xff] }
  0x51   : > { %v426_v32 = vld [vmem:[#allocation2 + $0x1c] sm:$0x3]  ;;  %v3164_v36 = vld [vmem:[#allocation3 + $0x1f8] sm:$0xf]  ;;  %v2948_v38 = vld [vmem:[#allocation3 + $0x48] sm:$0xf] }
  0x52   : > { %2212 = vmatmul.bf16.vlgmr.msra.gmra.mxu1 %v2985_v52  ;;  %2222 = vmatmul.bf16.vlgmr.msra.gmra.mxu2 %v3057_v53  ;;  %v3562_v37 = vld [vmem:[#allocation3 + $0x218] sm:$0xf0]  ;;  %v346_v39 = vsel %vm4047_vm2, %v344_v27, %v345_v22  ;;  %v481_v40 = vrot.slane %v425_v28, 6  ;;  %v484_v41 = vrot.slane %v426_v32, 6  ;;  %v563_v42 = vld [vmem:[#allocation2 + $0x70] sm:$0xf]  ;;  %v3021_v52 = vor.u32 %v3526_v25, %v3020_v24 }
  0x53   : > { %2292 = vmatpush.bf16.msrb.mxu2 %v3590_v46  ;;  %2243 = vmatpush.bf16.msrb.mxu1 %v3582_v47  ;;  %v3586_v43 = vld [vmem:[#allocation5 + $0x98] sm:$0xff]  ;;  %408 = vst [vmem:[#allocation3 + $0x70] sm:$0xf] %v346_v39  ;;  %v564_v46 = vld [vmem:[#allocation2 + $0x74] sm:$0xf]  ;;  %v3584_v6 = vld [vmem:[#allocation5 + $0x88] sm:$0xff] }
  0x54   : > { %2232 = vmatmul.bf16.vlgmr.msra.gmra.mxu3 %v3129_v54  ;;  %2202 = vmatmul.bf16.vlgmr.msra.gmra.mxu0 %v2913_v59  ;;  %v3578_v44 = vld [vmem:[#allocation5 + $0x58] sm:$0xff]  ;;  %v596_v47 = vld [vmem:[#allocation2 + $0x70] sm:$0x8]  ;;  %v3508_v48 = vld [vmem:[#allocation3 + $0x68] sm:$0xf0]  ;;  %v482_v49 = vsel %vm4053_vm5, %v2871_v29, %v481_v40  ;;  %v483_v50 = vrot.slane %v481_v40, 4  ;;  %v3165_v59 = vor.u32 %v3562_v37, %v3164_v36 }
  0x55   : > { %2341 = vmatpush.bf16.msrb.mxu3 %v3598_v55  ;;  %2390 = vmatpush.bf16.msrb.mxu0 %v3606_v56  ;;  %579 = vst [vmem:[#allocation3 + $0x54] sm:$0xf] %v563_v42  ;;  %v2879_v51 = vrot.slane %v596_v47, 11  ;;  %v597_v53 = vld [vmem:[#allocation2 + $0x74] sm:$0xf]  ;;  %v3093_v55 = vor.u32 %v3544_v31, %v3092_v30  ;;  %v2949_v60 = vor.u32 %v3508_v48, %v2948_v38  ;;  %v3594_v61 = vld [vmem:[#allocation5 + $0xd8] sm:$0xff] }
  0x56   : > { %546 = vst [vmem:[#allocation3 + $0x50] sm:$0xf] %v482_v49  ;;  %v598_v54 = vld [vmem:[#allocation2 + $0x78] sm:$0x7]  ;;  %v485_v56 = vsel %vm4053_vm5, %v483_v50, %v484_v41  ;;  %v650_v57 = vrot.slane %v597_v53, 7  ;;  %v3585_v1 = vld [vmem:[#allocation5 + $0x90] sm:$0xff] }
  0x57   : > { %2293 = vmatpush.bf16.msrb.mxu2 %v3589_v0  ;;  %2244 = vmatpush.bf16.msrb.mxu1 %v3581_v3  ;;  %580 = vst [vmem:[#allocation3 + $0x78] sm:$0xf] %v564_v46  ;;  %v653_v58 = vrot.slane %v598_v54, 7  ;;  %v3602_v62 = vld [vmem:[#allocation5 + $0x118] sm:$0xff]  ;;  %v3577_v2 = vld [vmem:[#allocation5 + $0x50] sm:$0xff]  ;;  %v3576_v7 = vld [vmem:[#allocation5 + $0x48] sm:$0xff] }
  0x58   : > { %547 = vst [vmem:[#allocation3 + $0x74] sm:$0xf] %v485_v56  ;;  %v651_v63 = vsel %vm4047_vm2, %v2879_v51, %v650_v57  ;;  %v652_v0 = vrot.slane %v650_v57, 4  ;;  %v3593_v4 = vld [vmem:[#allocation5 + $0xd0] sm:$0xff]  ;;  %v3592_v10 = vld [vmem:[#allocation5 + $0xc8] sm:$0xff]  ;;  %v3630_v42 = vld [vmem:[#allocation5 + $0x1f8] sm:$0xff] }
  0x59   : > { %2342 = vmatpush.bf16.msrb.mxu3 %v3597_v8  ;;  %2391 = vmatpush.bf16.msrb.mxu0 %v3605_v9  ;;  %715 = vst [vmem:[#allocation3 + $0x58] sm:$0xf] %v651_v63  ;;  %v3601_v5 = vld [vmem:[#allocation5 + $0x110] sm:$0xff]  ;;  %v288_v8 = vld [vmem:[#allocation2 + $0x20] sm:$0x8]  ;;  %v3600_v11 = vld [vmem:[#allocation5 + $0x108] sm:$0xff] }
  0x5a   : > { %v654_v3 = vsel %vm4047_vm2, %v652_v0, %v653_v58  ;;  %v289_v9 = vld [vmem:[#allocation2 + $0x24] sm:$0xf]  ;;  %v428_v19 = vld [vmem:[#allocation2 + $0x28] sm:$0xf]  ;;  %v429_v24 = vld [vmem:[#allocation2 + $0x2c] sm:$0x3] }
  0x5b   : > { %2294 = vmatpush.bf16.msrb.mxu2 %v3588_v12  ;;  %2245 = vmatpush.bf16.msrb.mxu1 %v3580_v13  ;;  %716 = vst [vmem:[#allocation3 + $0x7c] sm:$0xf] %v654_v3  ;;  %v290_v12 = vld [vmem:[#allocation2 + $0x28] sm:$0x7]  ;;  %v2864_v13 = vrot.slane %v288_v8, 11  ;;  %v349_v14 = vrot.slane %v289_v9, 7 }
  0x5c   : > { %v352_v17 = vrot.slane %v290_v12, 7  ;;  %v427_v18 = vld [vmem:[#allocation2 + $0x24] sm:$0xc]  ;;  %v2914_v27 = vld [vmem:[#allocation3 + $0x24] sm:$0xf0]  ;;  %v488_v30 = vrot.slane %v428_v19, 6 }
  0x5d   : > { %2343 = vmatpush.bf16.msrb.mxu3 %v3596_v15  ;;  %2392 = vmatpush.bf16.msrb.mxu0 %v3604_v16  ;;  %v3583_v15 = vld [vmem:[#allocation5 + $0x80] sm:$0xff]  ;;  %v350_v22 = vsel %vm4047_vm2, %v2864_v13, %v349_v14  ;;  %v351_v23 = vrot.slane %v349_v14, 4  ;;  %v2872_v25 = vrot.slane %v427_v18, 10  ;;  %v2920_v28 = vld [vmem:[#allocation3 + $0x8] sm:$0xf]  ;;  %v491_v31 = vrot.slane %v429_v24, 6 }
  0x5e   : > { %v3575_v16 = vld [vmem:[#allocation5 + $0x40] sm:$0xff]  ;;  %v3500_v29 = vld [vmem:[#allocation3 + $0x28] sm:$0xf0]  ;;  %409 = vst [vmem:[#allocation3 + $0x94] sm:$0xf] %v350_v22  ;;  %v3638_v49 = vld [vmem:[#allocation5 + $0x238] sm:$0xff] }
  0x5f   : > { %2295 = vmatpush.bf16.msrb.mxu2 %v3587_v20  ;;  %2246 = vmatpush.bf16.msrb.mxu1 %v3579_v21  ;;  %v3622_v20 = vld [vmem:[#allocation5 + $0x1b8] sm:$0xff]  ;;  %v3495_v26 = vld [vmem:[#allocation3 + $0x4] sm:$0xf]  ;;  %v565_v32 = vld [vmem:[#allocation2 + $0x80] sm:$0xf]  ;;  %v353_v40 = vsel %vm4047_vm2, %v351_v23, %v352_v17  ;;  %s3488_s5 = sshll.u32 %s3894_s19, 5 }
  0x60   : > { %v3614_v21 = vld [vmem:[#allocation5 + $0x178] sm:$0xff]  ;;  %v3496_v36 = vld [vmem:[#allocation3 + $0xc] sm:$0xf]  ;;  %v2922_v37 = vld [vmem:[#allocation3 + $0x2c] sm:$0xf0]  ;;  %v2917_v54 = vor.u32 %v3495_v26, %v2914_v27  ;;  %s2720_s9 = sadd.s32 %s3488_s5, %s3487_s27  ;;  %s2723_s7 = sshll.u32 %s4045_s6, 4  ;;  %s2724_s7 = int_to_ptr.vmem [resolvable:$true] %s2723_s7 }
  0x61   : > { %2344 = vmatpush.bf16.msrb.mxu3 %v3595_v33  ;;  %2393 = vmatpush.bf16.msrb.mxu0 %v3603_v34  ;;  %v3591_v33 = vld [vmem:[#allocation5 + $0xc0] sm:$0xff]  ;;  %v2928_v38 = vld [vmem:[#allocation3 + $0x10] sm:$0xf]  ;;  %v3501_v39 = vld [vmem:[#allocation3 + $0x30] sm:$0xf0]  ;;  %v2925_v56 = vor.u32 %v3496_v36, %v2922_v37  ;;  %s3489_s10 = sshll.u32 %s2720_s9, 3 }
  0x62   : > { %2217 = vmatmul.bf16.gmra.mxu1 %v3021_v52  ;;  %2227 = vmatmul.bf16.gmra.mxu2 %v3093_v55  ;;  %v3599_v34 = vld [vmem:[#allocation5 + $0x100] sm:$0xff]  ;;  %581 = vst [vmem:[#allocation3 + $0x9c] sm:$0xf] %v565_v32  ;;  %v601_v48 = vld [vmem:[#allocation2 + $0x88] sm:$0x7]  ;;  %v2921_v55 = vor.u32 %v3500_v29, %v2920_v28  ;;  %v2929_v57 = vor.u32 %v3501_v39, %v2928_v38  ;;  %v3637_v63 = vld [vmem:[#allocation5 + $0x230] sm:$0xff]  ;;  %s2722_s11 = scalar_lea.hbm %s4451_s4, %s3489_s10 }
  0x63   : > { %2296 = vmatpush.bf16.msrb.mxu2 %v3586_v43  ;;  %2247 = vmatpush.bf16.msrb.mxu1 %v3578_v44  ;;  %v566_v41 = vld [vmem:[#allocation2 + $0x84] sm:$0xf]  ;;  %410 = vst [vmem:[#allocation3 + $0xb8] sm:$0xf] %v353_v40  ;;  %v489_v43 = vsel %vm4053_vm5, %v2872_v25, %v488_v30  ;;  %v490_v44 = vrot.slane %v488_v30, 4  ;;  %v660_v53 = vrot.slane %v601_v48, 7 }
  0x64   : > { %2237 = vmatmul.bf16.gmra.mxu3 %v3165_v59  ;;  %2207 = vmatmul.bf16.gmra.mxu0 %v2949_v60  ;;  %v599_v46 = vld [vmem:[#allocation2 + $0x80] sm:$0x8]  ;;  %548 = vst [vmem:[#allocation3 + $0x98] sm:$0xf] %v489_v43  ;;  %v600_v47 = vld [vmem:[#allocation2 + $0x84] sm:$0xf] }
  0x65   : > { %2345 = vmatpush.bf16.msrb.mxu3 %v3594_v61  ;;  %2394 = vmatpush.bf16.msrb.mxu0 %v3602_v62  ;;  %v492_v50 = vsel %vm4053_vm5, %v490_v44, %v491_v31  ;;  %582 = vst [vmem:[#allocation3 + $0xc0] sm:$0xf] %v566_v41  ;;  %v2880_v51 = vrot.slane %v599_v46, 11  ;;  %v657_v52 = vrot.slane %v600_v47, 7  ;;  %v3621_v60 = vld [vmem:[#allocation5 + $0x1b0] sm:$0xff]  ;;  %v3612_v3 = vld [vmem:[#allocation5 + $0x168] sm:$0xff] }
  0x66   : > { %549 = vst [vmem:[#allocation3 + $0xbc] sm:$0xf] %v492_v50  ;;  %v3613_v61 = vld [vmem:[#allocation5 + $0x170] sm:$0xff]  ;;  %v431_v12 = vld [vmem:[#allocation2 + $0x38] sm:$0xf]  ;;  %v3619_v48 = vld [vmem:[#allocation5 + $0x1a0] sm:$0xff] }
  0x67   : > { %2297 = vmatpush.bf16.msrb.mxu2 %v3585_v1  ;;  %2248 = vmatpush.bf16.msrb.mxu1 %v3577_v2  ;;  %v658_v58 = vsel %vm4047_vm2, %v2880_v51, %v657_v52  ;;  %v659_v59 = vrot.slane %v657_v52, 4  ;;  %v3629_v62 = vld [vmem:[#allocation5 + $0x1f0] sm:$0xff]  ;;  %v3620_v1 = vld [vmem:[#allocation5 + $0x1a8] sm:$0xff]  ;;  %v495_v17 = vrot.slane %v431_v12, 6  ;;  %v2958_v25 = vld [vmem:[#allocation3 + $0x74] sm:$0xf0] }
  0x68   : > { %717 = vst [vmem:[#allocation3 + $0xa0] sm:$0xf] %v658_v58  ;;  %v3628_v2 = vld [vmem:[#allocation5 + $0x1e8] sm:$0xff]  ;;  %v567_v18 = vld [vmem:[#allocation2 + $0x90] sm:$0xf]  ;;  %v3611_v50 = vld [vmem:[#allocation5 + $0x160] sm:$0xff] }
  0x69   : > { %2346 = vmatpush.bf16.msrb.mxu3 %v3593_v4  ;;  %2395 = vmatpush.bf16.msrb.mxu0 %v3601_v5  ;;  %v661_v0 = vsel %vm4047_vm2, %v659_v59, %v660_v53  ;;  %v3636_v4 = vld [vmem:[#allocation5 + $0x228] sm:$0xff]  ;;  %v291_v5 = vld [vmem:[#allocation2 + $0x30] sm:$0x8]  ;;  %v3509_v22 = vld [vmem:[#allocation3 + $0x70] sm:$0xf0]  ;;  %v497_v30 = vrot.slane %v495_v17, 4 }
  0x6a   : > { %718 = vst [vmem:[#allocation3 + $0xc4] sm:$0xf] %v661_v0  ;;  %v2865_v8 = vrot.slane %v291_v5, 11  ;;  %v3504_v19 = vld [vmem:[#allocation3 + $0x4c] sm:$0xf]  ;;  %v3635_v51 = vld [vmem:[#allocation5 + $0x220] sm:$0xff] }
  0x6b   : > { %2298 = vmatpush.bf16.msrb.mxu2 %v3584_v6  ;;  %2249 = vmatpush.bf16.msrb.mxu1 %v3576_v7  ;;  %v292_v6 = vld [vmem:[#allocation2 + $0x34] sm:$0xf]  ;;  %v293_v7 = vld [vmem:[#allocation2 + $0x38] sm:$0x7]  ;;  %v3510_v27 = vld [vmem:[#allocation3 + $0x78] sm:$0xf0] }
  0x6c   : > { %v356_v9 = vrot.slane %v292_v6, 7  ;;  %v3505_v24 = vld [vmem:[#allocation3 + $0x54] sm:$0xf]  ;;  %v2964_v26 = vld [vmem:[#allocation3 + $0x58] sm:$0xf]  ;;  %s2725_s13 = sshll.u32 %s2722_s11, 4  ;;  %s2726_s13 = int_to_ptr.hbm [resolvable:$true] %s2725_s13 }
  0x6d   : > { %2347 = vmatpush.bf16.msrb.mxu3 %v3592_v10  ;;  %2396 = vmatpush.bf16.msrb.mxu0 %v3600_v11  ;;  %v430_v10 = vld [vmem:[#allocation2 + $0x34] sm:$0xc]  ;;  %v359_v11 = vrot.slane %v293_v7, 7  ;;  %583 = vst [vmem:[#allocation3 + $0xe4] sm:$0xf] %v567_v18  ;;  %v2961_v44 = vor.u32 %v3505_v24, %v2958_v25  ;;  %v2965_v46 = vor.u32 %v3510_v27, %v2964_v26  ;;  %s4469_s14 = sand.u32 1, %s3882_s16  }
  0x6e   : > { %v2873_v13 = vrot.slane %v430_v10, 10  ;;  %v357_v14 = vsel %vm4047_vm2, %v2865_v8, %v356_v9  ;;  %v568_v31 = vld [vmem:[#allocation2 + $0x94] sm:$0xf]  ;;  %v602_v32 = vld [vmem:[#allocation2 + $0x90] sm:$0x8]  ;;  %s2708_s24 = scalar_lea.sflag [#allocation7], %s4469_s14 }
  0x6f   : > { %2299 = vmatpush.bf16.msrb.mxu2 %v3583_v15  ;;  %2250 = vmatpush.bf16.msrb.mxu1 %v3575_v16  ;;  %v358_v15 = vrot.slane %v356_v9, 4  ;;  %v432_v16 = vld [vmem:[#allocation2 + $0x3c] sm:$0x3]  ;;  %411 = vst [vmem:[#allocation3 + $0xdc] sm:$0xf] %v357_v14  ;;  %v2881_v37 = vrot.slane %v602_v32, 11 }
  0x70   : > { %v498_v23 = vrot.slane %v432_v16, 6  ;;  %v496_v29 = vsel %vm4053_vm5, %v2873_v13, %v495_v17  ;;  %v604_v36 = vld [vmem:[#allocation2 + $0x98] sm:$0x7]  ;;  %584 = vst [vmem:[#allocation3 + $0x108] sm:$0xf] %v568_v31  ;;  %s3820_s23 = sshra.s32 %s2726_s13, 4  ;;  %s3821_s23 = int_to_ptr.hbm [resolvable:$true] %s3820_s23 }
  0x71   : > { %2348 = vmatpush.bf16.msrb.mxu3 %v3591_v33  ;;  %2397 = vmatpush.bf16.msrb.mxu0 %v3599_v34  ;;  %v360_v28 = vsel %vm4047_vm2, %v358_v15, %v359_v11  ;;  %v603_v33 = vld [vmem:[#allocation2 + $0x94] sm:$0xf]  ;;  %550 = vst [vmem:[#allocation3 + $0xe0] sm:$0xf] %v496_v29  ;;  %v667_v39 = vrot.slane %v604_v36, 7  ;;  %v3618_v29 = vld [vmem:[#allocation5 + $0x198] sm:$0xff]  ;;  %p3827_p11 = scmp.lt.s32.totalorder %s3821_s23, %s4451_s4 }
  0x72   : > { %2251 = vmatmul.bf16.vlgmr.msrb.gmra.mxu1 %v2917_v54  ;;  %2300 = vmatmul.bf16.vlgmr.msrb.gmra.mxu2 %v2921_v55  ;;  %412 = vst [vmem:[#allocation3 + $0x100] sm:$0xf] %v360_v28  ;;  %v499_v34 = vsel %vm4053_vm5, %v497_v30, %v498_v23  ;;  %v664_v38 = vrot.slane %v603_v33, 7  ;;  %v294_v52 = vld [vmem:[#allocation2 + $0x40] sm:$0x8]  ;;  %v3626_v30 = vld [vmem:[#allocation5 + $0x1d8] sm:$0xff] }
  0x73   : > { %2488 = vmatpush.bf16.msra.mxu2 %v3622_v20  ;;  %2439 = vmatpush.bf16.msra.mxu1 %v3614_v21  ;;  %v2950_v20 = vld [vmem:[#allocation3 + $0x6c] sm:$0xf0]  ;;  %551 = vst [vmem:[#allocation3 + $0x104] sm:$0xf] %v499_v34  ;;  %v295_v53 = vld [vmem:[#allocation2 + $0x44] sm:$0xf] }
  0x74   : > { %2349 = vmatmul.bf16.vlgmr.msrb.gmra.mxu3 %v2925_v56  ;;  %2398 = vmatmul.bf16.vlgmr.msrb.gmra.mxu0 %v2929_v57  ;;  %v2956_v21 = vld [vmem:[#allocation3 + $0x50] sm:$0xf]  ;;  %v2953_v40 = vor.u32 %v3504_v19, %v2950_v20  ;;  %v666_v43 = vrot.slane %v664_v38, 4  ;;  %v296_v54 = vld [vmem:[#allocation2 + $0x48] sm:$0x7]  ;;  %v2866_v55 = vrot.slane %v294_v52, 11 }
  0x75   : > { %2537 = vmatpush.bf16.msra.mxu3 %v3630_v42  ;;  %2586 = vmatpush.bf16.msra.mxu0 %v3638_v49  ;;  %v2957_v41 = vor.u32 %v3509_v22, %v2956_v21  ;;  %v665_v42 = vsel %vm4047_vm2, %v2881_v37, %v664_v38  ;;  %v3627_v49 = vld [vmem:[#allocation5 + $0x1e0] sm:$0xff]  ;;  %v363_v56 = vrot.slane %v295_v53, 7  ;;  %v366_v57 = vrot.slane %v296_v54, 7  ;;  %v434_v59 = vld [vmem:[#allocation2 + $0x48] sm:$0xf]  ;;  %v3610_v31 = vld [vmem:[#allocation5 + $0x158] sm:$0xff] }
  0x76   : > { %719 = vst [vmem:[#allocation3 + $0xe8] sm:$0xf] %v665_v42  ;;  %v668_v47 = vsel %vm4047_vm2, %v666_v43, %v667_v39  ;;  %v433_v58 = vld [vmem:[#allocation2 + $0x44] sm:$0xc]  ;;  %v3513_v0 = vld [vmem:[#allocation3 + $0x94] sm:$0xf] }
  0x77   : > { %2489 = vmatpush.bf16.msra.mxu2 %v3621_v60  ;;  %2440 = vmatpush.bf16.msra.mxu1 %v3613_v61  ;;  %720 = vst [vmem:[#allocation3 + $0x10c] sm:$0xf] %v668_v47  ;;  %v364_v60 = vsel %vm4047_vm2, %v2866_v55, %v363_v56  ;;  %v365_v61 = vrot.slane %v363_v56, 4  ;;  %v569_v6 = vld [vmem:[#allocation2 + $0xa0] sm:$0xf]  ;;  %v3634_v32 = vld [vmem:[#allocation5 + $0x218] sm:$0xff] }
  0x78   : > { %413 = vst [vmem:[#allocation3 + $0x124] sm:$0xf] %v364_v60  ;;  %v3514_v7 = vld [vmem:[#allocation3 + $0x9c] sm:$0xf]  ;;  %v2994_v8 = vld [vmem:[#allocation3 + $0xbc] sm:$0xf0] }
  0x79   : > { %2538 = vmatpush.bf16.msra.mxu3 %v3629_v62  ;;  %2587 = vmatpush.bf16.msra.mxu0 %v3637_v63  ;;  %v435_v62 = vld [vmem:[#allocation2 + $0x4c] sm:$0x3]  ;;  %v2874_v63 = vrot.slane %v433_v58, 10  ;;  %v3000_v9 = vld [vmem:[#allocation3 + $0xa0] sm:$0xf]  ;;  %v367_v11 = vsel %vm4047_vm2, %v365_v61, %v366_v57  ;;  %v2997_v26 = vor.u32 %v3514_v7, %v2994_v8  ;;  %s3822_s8 = scalar_lea.hbm %s3821_s23, 128 }
  0x7a   : > { %v505_v5 = vrot.slane %v435_v62, 6  ;;  %v3519_v10 = vld [vmem:[#allocation3 + $0xc0] sm:$0xf0]  ;;  %585 = vst [vmem:[#allocation3 + $0x12c] sm:$0xf] %v569_v6  ;;  %p3823_p7 = scmp.ne.s32.totalorder %s3821_s23, %s3822_s8  ;;  %s3826_s21 = scalar_lea.hbm %s4451_s4, 512 }
  0x7b   : > { %2490 = vmatpush.bf16.msra.mxu2 %v3620_v1  ;;  %2441 = vmatpush.bf16.msra.mxu1 %v3612_v3  ;;  %v2986_v1 = vld [vmem:[#allocation3 + $0xb4] sm:$0xf0]  ;;  %v3518_v3 = vld [vmem:[#allocation3 + $0xb8] sm:$0xf0]  ;;  %v570_v12 = vld [vmem:[#allocation2 + $0xa4] sm:$0xf]  ;;  %v3001_v27 = vor.u32 %v3519_v10, %v3000_v9  ;;  %p3828_p12 = scmp.lt.s32.totalorder %s3826_s21, %s3822_s8 }
  0x7c   : > { %v605_v13 = vld [vmem:[#allocation2 + $0xa0] sm:$0x8]  ;;  %414 = vst [vmem:[#allocation3 + $0x148] sm:$0xf] %v367_v11  ;;  %v606_v16 = vld [vmem:[#allocation2 + $0xa4] sm:$0xf]  ;;  %v2989_v22 = vor.u32 %v3513_v0, %v2986_v1  ;;  %p3824_p9 = pnand %p3823_p7, %p3991_p3 }
  0x7d   : > { %2539 = vmatpush.bf16.msra.mxu3 %v3628_v2  ;;  %2588 = vmatpush.bf16.msra.mxu0 %v3636_v4  ;;  %v2992_v2 = vld [vmem:[#allocation3 + $0x98] sm:$0xf]  ;;  %v502_v4 = vrot.slane %v434_v59, 6  ;;  %v2882_v17 = vrot.slane %v605_v13, 11  ;;  %v607_v18 = vld [vmem:[#allocation2 + $0xa8] sm:$0x7]  ;;  %p3829_p13 = por %p3828_p12, %p3827_p11 }
  0x7e   : > { %v671_v19 = vrot.slane %v606_v16, 7  ;;  %586 = vst [vmem:[#allocation3 + $0x150] sm:$0xf] %v570_v12  ;;  %v674_v21 = vrot.slane %v607_v18, 7  ;;  %v2993_v23 = vor.u32 %v3518_v3, %v2992_v2  ;;  %v297_v33 = vld [vmem:[#allocation2 + $0x50] sm:$0x8]  ;;  %p3825_p10 = pneg %p3824_p9 }
  0x7f   : > { %2491 = vmatpush.bf16.msra.mxu2 %v3619_v48  ;;  %2442 = vmatpush.bf16.msra.mxu1 %v3611_v50  ;;  %v503_v14 = vsel %vm4053_vm5, %v2874_v63, %v502_v4  ;;  %v504_v15 = vrot.slane %v502_v4, 4  ;;  %v298_v34 = vld [vmem:[#allocation2 + $0x54] sm:$0xf]  ;;  %v299_v36 = vld [vmem:[#allocation2 + $0x58] sm:$0x7]  ;;  %v2867_v37 = vrot.slane %v297_v33, 11 }
  0x80   : > { %552 = vst [vmem:[#allocation3 + $0x128] sm:$0xf] %v503_v14  ;;  %v672_v24 = vsel %vm4047_vm2, %v2882_v17, %v671_v19  ;;  %v673_v25 = vrot.slane %v671_v19, 4  ;;  %v370_v38 = vrot.slane %v298_v34, 7  ;;  %v373_v39 = vrot.slane %v299_v36, 7  ;;  %v3617_v12 = vld [vmem:[#allocation5 + $0x190] sm:$0xff]  ;;  %p3830_p0 = pnand %p3829_p13, %p3825_p10 }
  0x81   : > { %2540 = vmatpush.bf16.msra.mxu3 %v3627_v49  ;;  %2589 = vmatpush.bf16.msra.mxu0 %v3635_v51  ;;  %v506_v20 = vsel %vm4053_vm5, %v504_v15, %v505_v5  ;;  %721 = vst [vmem:[#allocation3 + $0x130] sm:$0xf] %v672_v24  ;;  %v3522_v47 = vld [vmem:[#allocation3 + $0xdc] sm:$0xf]  ;;  %v3022_v48 = vld [vmem:[#allocation3 + $0xfc] sm:$0xf0] }
  0x82   : > { %2256 = vmatmul.bf16.gmra.mxu1 %v2953_v40  ;;  %2305 = vmatmul.bf16.gmra.mxu2 %v2957_v41  ;;  %553 = vst [vmem:[#allocation3 + $0x14c] sm:$0xf] %v506_v20  ;;  %v675_v28 = vsel %vm4047_vm2, %v673_v25, %v674_v21  ;;  %v436_v40 = vld [vmem:[#allocation2 + $0x54] sm:$0xc]  ;;  %v437_v41 = vld [vmem:[#allocation2 + $0x58] sm:$0xf]  ;;  %v371_v42 = vsel %vm4047_vm2, %v2867_v37, %v370_v38 }
  0x83   : > { %722 = vst [vmem:[#allocation3 + $0x154] sm:$0xf] %v675_v28  ;;  %2492 = vmatpush.bf16.msra.mxu2 %v3618_v29  ;;  %2443 = vmatpush.bf16.msra.mxu1 %v3610_v31  ;;  %v372_v43 = vrot.slane %v370_v38, 4  ;;  %v3028_v49 = vld [vmem:[#allocation3 + $0xe0] sm:$0xf]  ;;  %v509_v51 = vrot.slane %v437_v41, 6  ;;  %v3025_v5 = vor.u32 %v3522_v47, %v3022_v48 }
  0x84   : > { %2354 = vmatmul.bf16.gmra.mxu3 %v2961_v44  ;;  %2403 = vmatmul.bf16.gmra.mxu0 %v2965_v46  ;;  %v438_v44 = vld [vmem:[#allocation2 + $0x5c] sm:$0x3]  ;;  %v2875_v46 = vrot.slane %v436_v40, 10  ;;  %v3527_v50 = vld [vmem:[#allocation3 + $0x100] sm:$0xf0]  ;;  %v3625_v13 = vld [vmem:[#allocation5 + $0x1d0] sm:$0xff] }
  0x85   : > { %2541 = vmatpush.bf16.msra.mxu3 %v3626_v30  ;;  %2590 = vmatpush.bf16.msra.mxu0 %v3634_v32  ;;  %415 = vst [vmem:[#allocation3 + $0x16c] sm:$0xf] %v371_v42  ;;  %v512_v52 = vrot.slane %v438_v44, 6  ;;  %v571_v53 = vld [vmem:[#allocation2 + $0xb0] sm:$0xf]  ;;  %v374_v58 = vsel %vm4047_vm2, %v372_v43, %v373_v39  ;;  %v511_v62 = vrot.slane %v509_v51, 4  ;;  %v3029_v6 = vor.u32 %v3527_v50, %v3028_v49 }
  0x86   : > { %v3523_v54 = vld [vmem:[#allocation3 + $0xe4] sm:$0xf]  ;;  %v3030_v55 = vld [vmem:[#allocation3 + $0x104] sm:$0xf0]  ;;  %v3528_v57 = vld [vmem:[#allocation3 + $0x108] sm:$0xf0]  ;;  %v510_v61 = vsel %vm4053_vm5, %v2875_v46, %v509_v51 }
  0x87   : > { %v3036_v56 = vld [vmem:[#allocation3 + $0xe8] sm:$0xf]  ;;  %v572_v59 = vld [vmem:[#allocation2 + $0xb4] sm:$0xf]  ;;  %587 = vst [vmem:[#allocation3 + $0x174] sm:$0xf] %v571_v53  ;;  %v513_v3 = vsel %vm4053_vm5, %v511_v62, %v512_v52  ;;  %v3033_v9 = vor.u32 %v3523_v54, %v3030_v55  ;;  %2493 = vmatpush.bf16.msra.mxu2 %v3617_v12 }
  0x88   : > { %v608_v60 = vld [vmem:[#allocation2 + $0xb0] sm:$0x8]  ;;  %416 = vst [vmem:[#allocation3 + $0x190] sm:$0xf] %v374_v58  ;;  %v609_v63 = vld [vmem:[#allocation2 + $0xb4] sm:$0xf]  ;;  %v3037_v10 = vor.u32 %v3528_v57, %v3036_v56 }
  0x89   : > { %v2883_v0 = vrot.slane %v608_v60, 11  ;;  %554 = vst [vmem:[#allocation3 + $0x170] sm:$0xf] %v510_v61  ;;  %v610_v1 = vld [vmem:[#allocation2 + $0xb8] sm:$0x7]  ;;  %v678_v2 = vrot.slane %v609_v63, 7  ;;  %2542 = vmatpush.bf16.msra.mxu3 %v3625_v13 }
  0x8a   : > { %588 = vst [vmem:[#allocation3 + $0x198] sm:$0xf] %v572_v59  ;;  %v681_v4 = vrot.slane %v610_v1, 7  ;;  %v3609_v14 = vld [vmem:[#allocation5 + $0x150] sm:$0xff]  ;;  %v300_v16 = vld [vmem:[#allocation2 + $0x60] sm:$0x8] }
  0x8b   : > { %555 = vst [vmem:[#allocation3 + $0x194] sm:$0xf] %v513_v3  ;;  %v679_v7 = vsel %vm4047_vm2, %v2883_v0, %v678_v2  ;;  %v680_v8 = vrot.slane %v678_v2, 4  ;;  %v3633_v15 = vld [vmem:[#allocation5 + $0x210] sm:$0xff]  ;;  %v301_v17 = vld [vmem:[#allocation2 + $0x64] sm:$0xf]  ;;  %2444 = vmatpush.bf16.msra.mxu1 %v3609_v14 }
  0x8c   : > { %723 = vst [vmem:[#allocation3 + $0x178] sm:$0xf] %v679_v7  ;;  %2591 = vmatpush.bf16.msra.mxu0 %v3633_v15  ;;  %v302_v18 = vld [vmem:[#allocation2 + $0x68] sm:$0x7]  ;;  %v2868_v19 = vrot.slane %v300_v16, 11  ;;  %v377_v20 = vrot.slane %v301_v17, 7 }
  0x8d   : > { %v682_v11 = vsel %vm4047_vm2, %v680_v8, %v681_v4  ;;  %v380_v21 = vrot.slane %v302_v18, 7  ;;  %v3531_v28 = vld [vmem:[#allocation3 + $0x124] sm:$0xf]  ;;  %v3058_v29 = vld [vmem:[#allocation3 + $0x144] sm:$0xf0] }
  0x8e   : > { %724 = vst [vmem:[#allocation3 + $0x19c] sm:$0xf] %v682_v11  ;;  %v378_v24 = vsel %vm4047_vm2, %v2868_v19, %v377_v20  ;;  %v379_v25 = vrot.slane %v377_v20, 4  ;;  %v3064_v30 = vld [vmem:[#allocation3 + $0x128] sm:$0xf]  ;;  %v3061_v52 = vor.u32 %v3531_v28, %v3058_v29 }
  0x8f   : > { %v3536_v31 = vld [vmem:[#allocation3 + $0x148] sm:$0xf0]  ;;  %417 = vst [vmem:[#allocation3 + $0x1b4] sm:$0xf] %v378_v24  ;;  %v573_v34 = vld [vmem:[#allocation2 + $0xc0] sm:$0xf] }
  0x90   : > { %v3532_v36 = vld [vmem:[#allocation3 + $0x12c] sm:$0xf]  ;;  %v3066_v37 = vld [vmem:[#allocation3 + $0x14c] sm:$0xf0]  ;;  %v3537_v39 = vld [vmem:[#allocation3 + $0x150] sm:$0xf0]  ;;  %v381_v40 = vsel %vm4047_vm2, %v379_v25, %v380_v21  ;;  %v3065_v53 = vor.u32 %v3536_v31, %v3064_v30 }
  0x91   : > { %v3072_v38 = vld [vmem:[#allocation3 + $0x130] sm:$0xf]  ;;  %v574_v41 = vld [vmem:[#allocation2 + $0xc4] sm:$0xf]  ;;  %589 = vst [vmem:[#allocation3 + $0x1bc] sm:$0xf] %v573_v34  ;;  %v3069_v56 = vor.u32 %v3532_v36, %v3066_v37 }
  0x92   : > { %2261 = vmatmul.bf16.gmra.mxu1 %v2989_v22  ;;  %2310 = vmatmul.bf16.gmra.mxu2 %v2993_v23  ;;  %v439_v22 = vld [vmem:[#allocation2 + $0x64] sm:$0xc]  ;;  %v440_v23 = vld [vmem:[#allocation2 + $0x68] sm:$0xf]  ;;  %v611_v42 = vld [vmem:[#allocation2 + $0xc0] sm:$0x8]  ;;  %v3073_v57 = vor.u32 %v3537_v39, %v3072_v38 }
  0x93   : > { %v516_v32 = vrot.slane %v440_v23, 6  ;;  %418 = vst [vmem:[#allocation3 + $0x1d8] sm:$0xf] %v381_v40  ;;  %v612_v46 = vld [vmem:[#allocation2 + $0xc4] sm:$0xf]  ;;  %v2884_v47 = vrot.slane %v611_v42, 11 }
  0x94   : > { %2359 = vmatmul.bf16.gmra.mxu3 %v2997_v26  ;;  %2408 = vmatmul.bf16.gmra.mxu0 %v3001_v27  ;;  %v441_v26 = vld [vmem:[#allocation2 + $0x6c] sm:$0x3]  ;;  %v2876_v27 = vrot.slane %v439_v22, 10  ;;  %v613_v48 = vld [vmem:[#allocation2 + $0xc8] sm:$0x7]  ;;  %v685_v49 = vrot.slane %v612_v46, 7 }
  0x95   : > { %v519_v33 = vrot.slane %v441_v26, 6  ;;  %v518_v44 = vrot.slane %v516_v32, 4  ;;  %590 = vst [vmem:[#allocation3 + $0x1e0] sm:$0xf] %v574_v41  ;;  %v688_v51 = vrot.slane %v613_v48, 7  ;;  %v3616_v59 = vld [vmem:[#allocation5 + $0x188] sm:$0xff] }
  0x96   : > { %v517_v43 = vsel %vm4053_vm5, %v2876_v27, %v516_v32  ;;  %v686_v54 = vsel %vm4047_vm2, %v2884_v47, %v685_v49  ;;  %v687_v55 = vrot.slane %v685_v49, 4  ;;  %v3624_v60 = vld [vmem:[#allocation5 + $0x1c8] sm:$0xff]  ;;  %v304_v61 = vld [vmem:[#allocation2 + $0x74] sm:$0xf]  ;;  %v443_v62 = vld [vmem:[#allocation2 + $0x78] sm:$0xf]  ;;  %2494 = vmatpush.bf16.msra.mxu2 %v3616_v59 }
  0x97   : > { %556 = vst [vmem:[#allocation3 + $0x1b8] sm:$0xf] %v517_v43  ;;  %v520_v50 = vsel %vm4053_vm5, %v518_v44, %v519_v33  ;;  %2543 = vmatpush.bf16.msra.mxu3 %v3624_v60  ;;  %v303_v63 = vld [vmem:[#allocation2 + $0x70] sm:$0x8]  ;;  %v305_v0 = vld [vmem:[#allocation2 + $0x78] sm:$0x7] }
  0x98   : > { %557 = vst [vmem:[#allocation3 + $0x1dc] sm:$0xf] %v520_v50  ;;  %v689_v58 = vsel %vm4047_vm2, %v687_v55, %v688_v51  ;;  %v3608_v1 = vld [vmem:[#allocation5 + $0x148] sm:$0xff]  ;;  %v2869_v2 = vrot.slane %v303_v63, 11  ;;  %v384_v3 = vrot.slane %v304_v61, 7  ;;  %v387_v4 = vrot.slane %v305_v0, 7 }
  0x99   : > { %725 = vst [vmem:[#allocation3 + $0x1c0] sm:$0xf] %v686_v54  ;;  %v523_v7 = vrot.slane %v443_v62, 6  ;;  %2445 = vmatpush.bf16.msra.mxu1 %v3608_v1  ;;  %v3632_v8 = vld [vmem:[#allocation5 + $0x208] sm:$0xff]  ;;  %v3094_v14 = vld [vmem:[#allocation3 + $0x18c] sm:$0xf0] }
  0x9a   : > { %726 = vst [vmem:[#allocation3 + $0x1e4] sm:$0xf] %v689_v58  ;;  %v3540_v13 = vld [vmem:[#allocation3 + $0x16c] sm:$0xf]  ;;  %v3100_v15 = vld [vmem:[#allocation3 + $0x170] sm:$0xf]  ;;  %2592 = vmatpush.bf16.msra.mxu0 %v3632_v8 }
  0x9b   : > { %v3545_v16 = vld [vmem:[#allocation3 + $0x190] sm:$0xf0]  ;;  %v525_v17 = vrot.slane %v523_v7, 4  ;;  %v575_v18 = vld [vmem:[#allocation2 + $0xd0] sm:$0xf]  ;;  %v3097_v33 = vor.u32 %v3540_v13, %v3094_v14  ;;  %v3615_v41 = vld [vmem:[#allocation5 + $0x180] sm:$0xff] }
  0x9c   : > { %v3541_v19 = vld [vmem:[#allocation3 + $0x174] sm:$0xf]  ;;  %v3102_v20 = vld [vmem:[#allocation3 + $0x194] sm:$0xf0]  ;;  %v3546_v22 = vld [vmem:[#allocation3 + $0x198] sm:$0xf0]  ;;  %v3101_v34 = vor.u32 %v3545_v16, %v3100_v15  ;;  %2495 = vmatpush.bf16.msra.mxu2 %v3615_v41 }
  0x9d   : > { %v3108_v21 = vld [vmem:[#allocation3 + $0x178] sm:$0xf]  ;;  %v576_v25 = vld [vmem:[#allocation2 + $0xd4] sm:$0xf]  ;;  %591 = vst [vmem:[#allocation3 + $0x204] sm:$0xf] %v575_v18  ;;  %v3105_v38 = vor.u32 %v3541_v19, %v3102_v20 }
  0x9e   : > { %v614_v26 = vld [vmem:[#allocation2 + $0xd0] sm:$0x8]  ;;  %v615_v28 = vld [vmem:[#allocation2 + $0xd4] sm:$0xf]  ;;  %v616_v29 = vld [vmem:[#allocation2 + $0xd8] sm:$0x7]  ;;  %v3109_v39 = vor.u32 %v3546_v22, %v3108_v21 }
  0x9f   : > { %v2885_v30 = vrot.slane %v614_v26, 11  ;;  %v692_v31 = vrot.slane %v615_v28, 7  ;;  %v695_v32 = vrot.slane %v616_v29, 7  ;;  %592 = vst [vmem:[#allocation3 + $0x228] sm:$0xf] %v576_v25  ;;  %v3623_v42 = vld [vmem:[#allocation5 + $0x1c0] sm:$0xff] }
  0xa0   : > { %v730_v43 = vld [vmem:[#allocation2 + $0x68] sm:$0xf]  ;;  %v899_v44 = vld [vmem:[#allocation2 + $0xc4] sm:$0xf]  ;;  %2544 = vmatpush.bf16.msra.mxu3 %v3623_v42  ;;  %v731_v47 = vld [vmem:[#allocation2 + $0x6c] sm:$0x3] }
  0xa1   : > { %v693_v36 = vsel %vm4047_vm2, %v2885_v30, %v692_v31  ;;  %v694_v37 = vrot.slane %v692_v31, 4  ;;  %v729_v46 = vld [vmem:[#allocation2 + $0x64] sm:$0xc]  ;;  %v779_v50 = vrot.slane %v730_v43, 6  ;;  %v782_v51 = vrot.slane %v731_v47, 6 }
  0xa2   : > { %2266 = vmatmul.bf16.gmra.mxu1 %v3025_v5  ;;  %2315 = vmatmul.bf16.gmra.mxu2 %v3029_v6  ;;  %v442_v5 = vld [vmem:[#allocation2 + $0x74] sm:$0xc]  ;;  %v444_v6 = vld [vmem:[#allocation2 + $0x7c] sm:$0x3]  ;;  %727 = vst [vmem:[#allocation3 + $0x208] sm:$0xf] %v693_v36 }
  0xa3   : > { %v2877_v11 = vrot.slane %v442_v5, 10  ;;  %v526_v12 = vrot.slane %v444_v6, 6  ;;  %v696_v40 = vsel %vm4047_vm2, %v694_v37, %v695_v32  ;;  %v3607_v48 = vld [vmem:[#allocation5 + $0x140] sm:$0xff]  ;;  %v2886_v49 = vrot.slane %v729_v46, 10  ;;  %v3549_v59 = vld [vmem:[#allocation3 + $0x1b4] sm:$0xf] }
  0xa4   : > { %2364 = vmatmul.bf16.gmra.mxu3 %v3033_v9  ;;  %2413 = vmatmul.bf16.gmra.mxu0 %v3037_v10  ;;  %v385_v9 = vsel %vm4047_vm2, %v2869_v2, %v384_v3  ;;  %v386_v10 = vrot.slane %v384_v3, 4  ;;  %728 = vst [vmem:[#allocation3 + $0x22c] sm:$0xf] %v696_v40  ;;  %v948_v54 = vrot.slane %v899_v44, 7  ;;  %v3631_v55 = vld [vmem:[#allocation5 + $0x200] sm:$0xff] }
  0xa5   : > { %419 = vst [vmem:[#allocation3 + $0x1fc] sm:$0xf] %v385_v9  ;;  %v524_v24 = vsel %vm4053_vm5, %v2877_v11, %v523_v7  ;;  %v527_v27 = vsel %vm4053_vm5, %v525_v17, %v526_v12  ;;  %2446 = vmatpush.bf16.msra.mxu1 %v3607_v48  ;;  %v866_v58 = vld [vmem:[#allocation2 + $0xc0] sm:$0xf]  ;;  %v3130_v60 = vld [vmem:[#allocation3 + $0x1d4] sm:$0xf0]  ;;  %2593 = vmatpush.bf16.msra.mxu0 %v3631_v55 }
  0xa6   : > { %v388_v23 = vsel %vm4047_vm2, %v386_v10, %v387_v4  ;;  %558 = vst [vmem:[#allocation3 + $0x200] sm:$0xf] %v524_v24  ;;  %v3136_v61 = vld [vmem:[#allocation3 + $0x1b8] sm:$0xf]  ;;  %v3554_v62 = vld [vmem:[#allocation3 + $0x1d8] sm:$0xf0]  ;;  %v3133_v16 = vor.u32 %v3549_v59, %v3130_v60 }
  0xa7   : > { %420 = vst [vmem:[#allocation3 + $0x220] sm:$0xf] %v388_v23  ;;  %v867_v63 = vld [vmem:[#allocation2 + $0xc4] sm:$0xf]  ;;  %v950_v1 = vrot.slane %v948_v54, 4  ;;  %v3137_v17 = vor.u32 %v3554_v62, %v3136_v61 }
  0xa8   : > { %559 = vst [vmem:[#allocation3 + $0x224] sm:$0xf] %v527_v27  ;;  %v3550_v2 = vld [vmem:[#allocation3 + $0x1bc] sm:$0xf]  ;;  %v3138_v3 = vld [vmem:[#allocation3 + $0x1dc] sm:$0xf0] }
  0xa9   : > { %v3144_v4 = vld [vmem:[#allocation3 + $0x1c0] sm:$0xf]  ;;  %v3555_v5 = vld [vmem:[#allocation3 + $0x1e0] sm:$0xf0]  ;;  %882 = vst [vmem:[#allocation3 + $0x18] sm:$0xf] %v866_v58  ;;  %v3141_v21 = vor.u32 %v3550_v2, %v3138_v3 }
  0xaa   : > { %v1034_v8 = vld [vmem:[#allocation2 + $0xc4] sm:$0xc]  ;;  %v1035_v10 = vld [vmem:[#allocation2 + $0xc8] sm:$0xf]  ;;  %v1036_v11 = vld [vmem:[#allocation2 + $0xcc] sm:$0x3]  ;;  %v3145_v22 = vor.u32 %v3555_v5, %v3144_v4 }
  0xab   : > { %883 = vst [vmem:[#allocation3 + $0x3c] sm:$0xf] %v867_v63  ;;  %v2902_v13 = vrot.slane %v1034_v8, 10  ;;  %v1084_v14 = vrot.slane %v1035_v10, 6  ;;  %v1087_v15 = vrot.slane %v1036_v11, 6 }
  0xac   : > { %v733_v25 = vld [vmem:[#allocation2 + $0x78] sm:$0xf]  ;;  %v902_v26 = vld [vmem:[#allocation2 + $0xd4] sm:$0xf]  ;;  %v734_v31 = vld [vmem:[#allocation2 + $0x7c] sm:$0x3] }
  0xad   : > { %v1085_v18 = vsel %vm4053_vm5, %v2902_v13, %v1084_v14  ;;  %v1086_v19 = vrot.slane %v1084_v14, 4  ;;  %v786_v27 = vrot.slane %v733_v25, 6  ;;  %v955_v28 = vrot.slane %v902_v26, 7  ;;  %v732_v30 = vld [vmem:[#allocation2 + $0x74] sm:$0xc] }
  0xae   : > { %1154 = vst [vmem:[#allocation3 + $0x20] sm:$0xf] %v1085_v18  ;;  %v789_v36 = vrot.slane %v734_v31, 6  ;;  %v868_v44 = vld [vmem:[#allocation2 + $0xd0] sm:$0xf] }
  0xaf   : > { %v1088_v24 = vsel %vm4053_vm5, %v1086_v19, %v1087_v15  ;;  %v957_v40 = vrot.slane %v955_v28, 4  ;;  %v869_v46 = vld [vmem:[#allocation2 + $0xd4] sm:$0xf]  ;;  %v3558_v47 = vld [vmem:[#allocation3 + $0x1fc] sm:$0xf] }
  0xb0   : > { %1155 = vst [vmem:[#allocation3 + $0x44] sm:$0xf] %v1088_v24  ;;  %v3166_v48 = vld [vmem:[#allocation3 + $0x21c] sm:$0xf0]  ;;  %v3174_v55 = vld [vmem:[#allocation3 + $0x224] sm:$0xf0] }
  0xb1   : > { %v3180_v58 = vld [vmem:[#allocation3 + $0x208] sm:$0xf]  ;;  %884 = vst [vmem:[#allocation3 + $0x60] sm:$0xf] %v868_v44  ;;  %v3564_v63 = vld [vmem:[#allocation3 + $0x228] sm:$0xf0]  ;;  %v3169_v5 = vor.u32 %v3558_v47, %v3166_v48 }
  0xb2   : > { %2271 = vmatmul.bf16.gmra.mxu1 %v3061_v52  ;;  %2320 = vmatmul.bf16.gmra.mxu2 %v3065_v53  ;;  %v898_v52 = vld [vmem:[#allocation2 + $0xc0] sm:$0x8]  ;;  %v900_v53 = vld [vmem:[#allocation2 + $0xc8] sm:$0x7]  ;;  %885 = vst [vmem:[#allocation3 + $0x84] sm:$0xf] %v869_v46 }
  0xb3   : > { %v2894_v0 = vrot.slane %v898_v52, 11  ;;  %v951_v7 = vrot.slane %v900_v53, 7  ;;  %v1037_v53 = vld [vmem:[#allocation2 + $0xd4] sm:$0xc]  ;;  %v905_v13 = vld [vmem:[#allocation2 + $0xe4] sm:$0xf] }
  0xb4   : > { %2369 = vmatmul.bf16.gmra.mxu3 %v3069_v56  ;;  %2418 = vmatmul.bf16.gmra.mxu0 %v3073_v57  ;;  %v780_v56 = vsel %vm4053_vm5, %v2886_v49, %v779_v50  ;;  %v781_v57 = vrot.slane %v779_v50, 4  ;;  %v3172_v49 = vld [vmem:[#allocation3 + $0x200] sm:$0xf]  ;;  %v3563_v50 = vld [vmem:[#allocation3 + $0x220] sm:$0xf0]  ;;  %v2903_v61 = vrot.slane %v1037_v53, 10 }
  0xb5   : > { %849 = vst [vmem:[#allocation3 + $0x14] sm:$0xf] %v780_v56  ;;  %v949_v9 = vsel %vm4047_vm2, %v2894_v0, %v948_v54  ;;  %v952_v12 = vsel %vm4047_vm2, %v950_v1, %v951_v7  ;;  %v3559_v54 = vld [vmem:[#allocation3 + $0x204] sm:$0xf]  ;;  %v1038_v56 = vld [vmem:[#allocation2 + $0xd8] sm:$0xf] }
  0xb6   : > { %v783_v6 = vsel %vm4053_vm5, %v781_v57, %v782_v51  ;;  %1018 = vst [vmem:[#allocation3 + $0x1c] sm:$0xf] %v949_v9  ;;  %v1039_v57 = vld [vmem:[#allocation2 + $0xdc] sm:$0x3]  ;;  %v1091_v62 = vrot.slane %v1038_v56, 6  ;;  %v3177_v8 = vor.u32 %v3559_v54, %v3174_v55  ;;  %v3181_v9 = vor.u32 %v3564_v63, %v3180_v58 }
  0xb7   : > { %850 = vst [vmem:[#allocation3 + $0x38] sm:$0xf] %v783_v6  ;;  %v1094_v0 = vrot.slane %v1039_v57, 6  ;;  %v3173_v6 = vor.u32 %v3563_v50, %v3172_v49  ;;  %v962_v18 = vrot.slane %v905_v13, 7  ;;  %v904_v26 = vld [vmem:[#allocation2 + $0xe0] sm:$0x8] }
  0xb8   : > { %1019 = vst [vmem:[#allocation3 + $0x40] sm:$0xf] %v952_v12  ;;  %v1092_v2 = vsel %vm4053_vm5, %v2903_v61, %v1091_v62  ;;  %v1093_v3 = vrot.slane %v1091_v62, 4  ;;  %v736_v12 = vld [vmem:[#allocation2 + $0x88] sm:$0xf] }
  0xb9   : > { %1156 = vst [vmem:[#allocation3 + $0x68] sm:$0xf] %v1092_v2  ;;  %v793_v14 = vrot.slane %v736_v12, 6  ;;  %v1040_v46 = vld [vmem:[#allocation2 + $0xe4] sm:$0xc] }
  0xba   : > { %v1095_v10 = vsel %vm4053_vm5, %v1093_v3, %v1094_v0  ;;  %v1041_v50 = vld [vmem:[#allocation2 + $0xe8] sm:$0xf]  ;;  %v2904_v53 = vrot.slane %v1040_v46, 10  ;;  %v2944_v56 = vld [vmem:[#allocation3 + $0x20] sm:$0xf] }
  0xbb   : > { %1157 = vst [vmem:[#allocation3 + $0x8c] sm:$0xf] %v1095_v10  ;;  %v1098_v54 = vrot.slane %v1041_v50, 6  ;;  %v3503_v57 = vld [vmem:[#allocation3 + $0x40] sm:$0xf0] }
  0xbc   : > { %v2945_v3 = vor.u32 %v3503_v57, %v2944_v56  ;;  %v908_v10 = vld [vmem:[#allocation2 + $0xf4] sm:$0xf]  ;;  %v2972_v46 = vld [vmem:[#allocation3 + $0x60] sm:$0xf] }
  0xbd   : > { %v3498_v47 = vld [vmem:[#allocation3 + $0x1c] sm:$0xf] }
  0xbf   : > { %v2938_v48 = vld [vmem:[#allocation3 + $0x3c] sm:$0xf0] }
  0xc0   : > { %v2941_v2 = vor.u32 %v3498_v47, %v2938_v48  ;;  %v3511_v47 = vld [vmem:[#allocation3 + $0x80] sm:$0xf0] }
  0xc2   : > { %2276 = vmatmul.bf16.gmra.mxu1 %v3097_v33  ;;  %2325 = vmatmul.bf16.gmra.mxu2 %v3101_v34  ;;  %v2887_v33 = vrot.slane %v732_v30, 10  ;;  %v788_v34 = vrot.slane %v786_v27, 4 }
  0xc4   : > { %2374 = vmatmul.bf16.gmra.mxu3 %v3105_v38  ;;  %2423 = vmatmul.bf16.gmra.mxu0 %v3109_v39  ;;  %v901_v38 = vld [vmem:[#allocation2 + $0xd0] sm:$0x8]  ;;  %v903_v39 = vld [vmem:[#allocation2 + $0xd8] sm:$0x7]  ;;  %v787_v42 = vsel %vm4053_vm5, %v2887_v33, %v786_v27  ;;  %v790_v43 = vsel %vm4053_vm5, %v788_v34, %v789_v36  ;;  %v906_v27 = vld [vmem:[#allocation2 + $0xe8] sm:$0x7] }
  0xc5   : > { %851 = vst [vmem:[#allocation3 + $0x5c] sm:$0xf] %v787_v42  ;;  %v2895_v51 = vrot.slane %v901_v38, 11  ;;  %v958_v52 = vrot.slane %v903_v39, 7  ;;  %v870_v33 = vld [vmem:[#allocation2 + $0xe0] sm:$0xf] }
  0xc6   : > { %852 = vst [vmem:[#allocation3 + $0x80] sm:$0xf] %v790_v43  ;;  %v871_v34 = vld [vmem:[#allocation2 + $0xe4] sm:$0xf]  ;;  %v2896_v36 = vrot.slane %v904_v26, 11  ;;  %v964_v43 = vrot.slane %v962_v18, 4 }
  0xc7   : > { %v956_v59 = vsel %vm4047_vm2, %v2895_v51, %v955_v28  ;;  %v959_v60 = vsel %vm4047_vm2, %v957_v40, %v958_v52  ;;  %v3497_v38 = vld [vmem:[#allocation3 + $0x14] sm:$0xf]  ;;  %v2930_v39 = vld [vmem:[#allocation3 + $0x34] sm:$0xf0]  ;;  %v3502_v42 = vld [vmem:[#allocation3 + $0x38] sm:$0xf0] }
  0xc8   : > { %1020 = vst [vmem:[#allocation3 + $0x64] sm:$0xf] %v956_v59  ;;  %v2936_v40 = vld [vmem:[#allocation3 + $0x18] sm:$0xf]  ;;  %v965_v44 = vrot.slane %v906_v27, 7  ;;  %v963_v49 = vsel %vm4047_vm2, %v2896_v36, %v962_v18  ;;  %v1099_v59 = vsel %vm4053_vm5, %v2904_v53, %v1098_v54  ;;  %v2933_v62 = vor.u32 %v3497_v38, %v2930_v39 }
  0xc9   : > { %1021 = vst [vmem:[#allocation3 + $0x88] sm:$0xf] %v959_v60  ;;  %v1042_v51 = vld [vmem:[#allocation2 + $0xec] sm:$0x3]  ;;  %v1100_v60 = vrot.slane %v1098_v54, 4  ;;  %v2937_v63 = vor.u32 %v3502_v42, %v2936_v40 }
  0xca   : > { %886 = vst [vmem:[#allocation3 + $0xa8] sm:$0xf] %v870_v33  ;;  %v966_v52 = vsel %vm4047_vm2, %v964_v43, %v965_v44  ;;  %v1101_v55 = vrot.slane %v1042_v51, 6  ;;  %v907_v26 = vld [vmem:[#allocation2 + $0xf0] sm:$0x8] }
  0xcb   : > { %887 = vst [vmem:[#allocation3 + $0xcc] sm:$0xf] %v871_v34  ;;  %v872_v39 = vld [vmem:[#allocation2 + $0xf0] sm:$0xf]  ;;  %v873_v40 = vld [vmem:[#allocation2 + $0xf4] sm:$0xf] }
  0xcc   : > { %1022 = vst [vmem:[#allocation3 + $0xac] sm:$0xf] %v963_v49  ;;  %v1043_v42 = vld [vmem:[#allocation2 + $0xf4] sm:$0xc]  ;;  %v3506_v43 = vld [vmem:[#allocation3 + $0x5c] sm:$0xf] }
  0xcd   : > { %1023 = vst [vmem:[#allocation3 + $0xd0] sm:$0xf] %v966_v52  ;;  %v2966_v44 = vld [vmem:[#allocation3 + $0x7c] sm:$0xf0]  ;;  %v1044_v51 = vld [vmem:[#allocation2 + $0xf8] sm:$0xf] }
  0xce   : > { %1158 = vst [vmem:[#allocation3 + $0xb0] sm:$0xf] %v1099_v59  ;;  %v1045_v54 = vld [vmem:[#allocation2 + $0xfc] sm:$0x3]  ;;  %v1105_v56 = vrot.slane %v1044_v51, 6 }
  0xcf   : > { %v4161_v20 = vpop.f32.mrf.mxu1  ;;  %v3507_v52 = vld [vmem:[#allocation3 + $0x64] sm:$0xf]  ;;  %v2980_v59 = vld [vmem:[#allocation3 + $0x68] sm:$0xf]  ;;  %888 = vst [vmem:[#allocation3 + $0xf0] sm:$0xf] %v872_v39 }
  0xd0   : > { %889 = vst [vmem:[#allocation3 + $0x114] sm:$0xf] %v873_v40  ;;  %v1046_v51 = vld [vmem:[#allocation2 + $0x104] sm:$0xc] }
  0xd1   : > { %v4163_v23 = vpop.f32.mrf.mxu0 }
  0xd2   : > { %2281 = vmatmul.bf16.gmra.mxu1 %v3133_v16  ;;  %2330 = vmatmul.bf16.gmra.mxu2 %v3137_v17  ;;  %v735_v16 = vld [vmem:[#allocation2 + $0x84] sm:$0xc]  ;;  %v737_v17 = vld [vmem:[#allocation2 + $0x8c] sm:$0x3] }
  0xd3   : > { %v796_v24 = vrot.slane %v737_v17, 6  ;;  %v969_v17 = vrot.slane %v908_v10, 7  ;;  %v2973_v10 = vor.u32 %v3511_v47, %v2972_v46 }
  0xd4   : > { %2379 = vmatmul.bf16.gmra.mxu3 %v3141_v21  ;;  %2428 = vmatmul.bf16.gmra.mxu0 %v3145_v22  ;;  %v2888_v21 = vrot.slane %v735_v16, 10  ;;  %v795_v22 = vrot.slane %v793_v14, 4  ;;  %v740_v16 = vld [vmem:[#allocation2 + $0x9c] sm:$0x3] }
  0xd5   : > { %v4167_v29 = vpop.f32.mrf.mxu2  ;;  %v971_v49 = vrot.slane %v969_v17, 4 }
  0xd6   : > { %v794_v30 = vsel %vm4053_vm5, %v2888_v21, %v793_v14  ;;  %v797_v31 = vsel %vm4053_vm5, %v795_v22, %v796_v24  ;;  %v738_v14 = vld [vmem:[#allocation2 + $0x94] sm:$0xc] }
  0xd7   : > { %v4169_v32 = vpop.f32.mrf.mxu3  ;;  %v4171_v37 = vpop.f32.mrf.mxu1  ;;  %853 = vst [vmem:[#allocation3 + $0xa4] sm:$0xf] %v794_v30  ;;  %v2889_v22 = vrot.slane %v738_v14, 10  ;;  %v909_v30 = vld [vmem:[#allocation2 + $0xf8] sm:$0x7] }
  0xd8   : > { %854 = vst [vmem:[#allocation3 + $0xc8] sm:$0xf] %v797_v31  ;;  %v2897_v31 = vrot.slane %v907_v26, 11  ;;  %v972_v50 = vrot.slane %v909_v30, 7  ;;  %v743_v30 = vld [vmem:[#allocation2 + $0xac] sm:$0x3] }
  0xd9   : > { %v4173_v41 = vpop.f32.mrf.mxu0 }
  0xda   : > { %v970_v53 = vsel %vm4047_vm2, %v2897_v31, %v969_v17 }
  0xdb   : > { %1024 = vst [vmem:[#allocation3 + $0xf4] sm:$0xf] %v970_v53  ;;  %v3008_v53 = vld [vmem:[#allocation3 + $0xa8] sm:$0xf] }
  0xdd   : > { %v4183_v1 = vpop.f32.mrf.mxu2 }
  0xdf   : > { %v4187_v4 = vpop.f32.mrf.mxu3  ;;  %v4189_v7 = vpop.f32.mrf.mxu1 }
  0xe1   : > { %v4193_v11 = vpop.f32.mrf.mxu0 }
  0xe2   : > { %2286 = vmatmul.bf16.gmra.mxu1 %v3169_v5  ;;  %2335 = vmatmul.bf16.gmra.mxu2 %v3173_v6  ;;  %v1102_v5 = vsel %vm4053_vm5, %v1100_v60, %v1101_v55  ;;  %v2905_v55 = vrot.slane %v1043_v42, 10  ;;  %v973_v60 = vsel %vm4047_vm2, %v971_v49, %v972_v50  ;;  %v810_v42 = vrot.slane %v743_v30, 6  ;;  %v874_v49 = vld [vmem:[#allocation2 + $0x100] sm:$0xf]  ;;  %v875_v50 = vld [vmem:[#allocation2 + $0x104] sm:$0xf] }
  0xe3   : > { %1159 = vst [vmem:[#allocation3 + $0xd4] sm:$0xf] %v1102_v5 }
  0xe4   : > { %2384 = vmatmul.bf16.gmra.mxu3 %v3177_v8  ;;  %2433 = vmatmul.bf16.gmra.mxu0 %v3181_v9  ;;  %v739_v9 = vld [vmem:[#allocation2 + $0x98] sm:$0xf]  ;;  %1025 = vst [vmem:[#allocation3 + $0x118] sm:$0xf] %v973_v60  ;;  %v1047_v60 = vld [vmem:[#allocation2 + $0x108] sm:$0xf] }
  0xe5   : > { %v4195_v15 = vpop.f32.mrf.mxu2  ;;  %v800_v12 = vrot.slane %v739_v9, 6  ;;  %v2969_v9 = vor.u32 %v3506_v43, %v2966_v44  ;;  %v912_v43 = vld [vmem:[#allocation2 + $0x108] sm:$0x7]  ;;  %890 = vst [vmem:[#allocation3 + $0x138] sm:$0xf] %v874_v49 }
  0xe6   : > { %891 = vst [vmem:[#allocation3 + $0x15c] sm:$0xf] %v875_v50 }
  0xe7   : > { %v4197_v19 = vpop.f32.mrf.mxu3  ;;  %v4199_v25 = vpop.f32.mrf.mxu1  ;;  %v802_v24 = vrot.slane %v800_v12, 4  ;;  %v801_v38 = vsel %vm4053_vm5, %v2889_v22, %v800_v12  ;;  %v742_v22 = vld [vmem:[#allocation2 + $0xa8] sm:$0xf] }
  0xe8   : > { %855 = vst [vmem:[#allocation3 + $0xec] sm:$0xf] %v801_v38  ;;  %v807_v26 = vrot.slane %v742_v22, 6 }
  0xe9   : > { %v4201_v28 = vpop.f32.mrf.mxu0 }
  0xea   : > { %v809_v39 = vrot.slane %v807_v26, 4 }
  0xed   : > { %v4211_v58 = vpop.f32.mrf.mxu2 }
  0xef   : > { %v4215_v61 = vpop.f32.mrf.mxu3  ;;  %v2252_v0 = vpop.f32.mrf.mxu1 }
  0xf0   : > { %v2253_v6 = vadd.f32 %v2252_v0, %v4163_v23  ;;  %v803_v23 = vrot.slane %v740_v16, 6  ;;  %v1106_v0 = vsel %vm4053_vm5, %v2905_v55, %v1105_v56  ;;  %v811_v55 = vsel %vm4053_vm5, %v809_v39, %v810_v42  ;;  %v914_v39 = vld [vmem:[#allocation2 + $0x114] sm:$0xf] }
  0xf1   : > { %v2399_v8 = vpop.f32.mrf.mxu0  ;;  %1160 = vst [vmem:[#allocation3 + $0xf8] sm:$0xf] %v1106_v0  ;;  %v1048_v0 = vld [vmem:[#allocation2 + $0x10c] sm:$0x3]  ;;  %v744_v42 = vld [vmem:[#allocation2 + $0xb4] sm:$0xc] }
  0xf2   : > { %2447 = vmatmul.bf16.vlgmr.msra.gmra.mxu1 %v2933_v62  ;;  %2496 = vmatmul.bf16.vlgmr.msra.gmra.mxu2 %v2937_v63  ;;  %v804_v48 = vsel %vm4053_vm5, %v802_v24, %v803_v23  ;;  %v1108_v62 = vrot.slane %v1045_v54, 6  ;;  %v3512_v63 = vld [vmem:[#allocation3 + $0x88] sm:$0xf0]  ;;  %v911_v24 = vld [vmem:[#allocation2 + $0x104] sm:$0xf] }
  0xf3   : > { %856 = vst [vmem:[#allocation3 + $0x110] sm:$0xf] %v804_v48  ;;  %v2981_v14 = vor.u32 %v3512_v63, %v2980_v59  ;;  %v741_v23 = vld [vmem:[#allocation2 + $0xa4] sm:$0xc]  ;;  %v976_v31 = vrot.slane %v911_v24, 7  ;;  %v979_v59 = vrot.slane %v912_v43, 7 }
  0xf4   : > { %2545 = vmatmul.bf16.vlgmr.msra.gmra.mxu3 %v2941_v2  ;;  %2594 = vmatmul.bf16.vlgmr.msra.gmra.mxu0 %v2945_v3  ;;  %v1107_v2 = vrot.slane %v1105_v56, 4  ;;  %v2890_v38 = vrot.slane %v741_v23, 10  ;;  %v3520_v54 = vld [vmem:[#allocation3 + $0xc8] sm:$0xf0]  ;;  %858 = vst [vmem:[#allocation3 + $0x158] sm:$0xf] %v811_v55 }
  0xf5   : > { %v2301_v13 = vpop.f32.mrf.mxu2  ;;  %v978_v56 = vrot.slane %v976_v31, 4  ;;  %v3009_v24 = vor.u32 %v3520_v54, %v3008_v53  ;;  %v746_v43 = vld [vmem:[#allocation2 + $0xbc] sm:$0x3] }
  0xf6   : > { %v2302_v18 = vadd.f32 %v2301_v13, %v2253_v6  ;;  %v808_v48 = vsel %vm4053_vm5, %v2890_v38, %v807_v26  ;;  %v745_v38 = vld [vmem:[#allocation2 + $0xb8] sm:$0xf] }
  0xf7   : > { %v2350_v21 = vpop.f32.mrf.mxu3  ;;  %v2254_v27 = vpop.f32.mrf.mxu1  ;;  %857 = vst [vmem:[#allocation3 + $0x134] sm:$0xf] %v808_v48  ;;  %v2891_v48 = vrot.slane %v744_v42, 10 }
  0xf8   : > { %v2351_v33 = vadd.f32 %v2350_v21, %v2302_v18  ;;  %v2255_v34 = vadd.f32 %v2254_v27, %v4173_v41  ;;  %v2974_v41 = vld [vmem:[#allocation3 + $0x84] sm:$0xf0] }
  0xf9   : > { %v2401_v36 = vpop.f32.mrf.mxu0  ;;  %v2977_v13 = vor.u32 %v3507_v52, %v2974_v41  ;;  %v3515_v52 = vld [vmem:[#allocation3 + $0xa4] sm:$0xf]  ;;  %v3002_v41 = vld [vmem:[#allocation3 + $0xc4] sm:$0xf0] }
  0xfa   : > { %v4227_v57 = vadd.f32 %v2399_v8, %v2351_v33  ;;  %v1109_v8 = vsel %vm4053_vm5, %v1107_v2, %v1108_v62  ;;  %v3516_v62 = vld [vmem:[#allocation3 + $0xac] sm:$0xf]  ;;  %v2906_v2 = vrot.slane %v1046_v51, 10  ;;  %v3005_v22 = vor.u32 %v3515_v52, %v3002_v41  ;;  %v915_v52 = vld [vmem:[#allocation2 + $0x118] sm:$0x7] }
  0xfb   : > { %1161 = vst [vmem:[#allocation3 + $0x11c] sm:$0xf] %v1109_v8  ;;  %v3521_v8 = vld [vmem:[#allocation3 + $0xd0] sm:$0xf0]  ;;  %v817_v51 = vrot.slane %v746_v43, 6 }
  0xfd   : > { %v2303_v3 = vpop.f32.mrf.mxu2 }
  0xfe   : > { %v2304_v5 = vadd.f32 %v2303_v3, %v2255_v34  ;;  %v1112_v3 = vrot.slane %v1047_v60, 6  ;;  %v1049_v60 = vld [vmem:[#allocation2 + $0x114] sm:$0xc] }
  0xff   : > { %v2352_v6 = vpop.f32.mrf.mxu3  ;;  %v2257_v12 = vpop.f32.mrf.mxu1 }
 0x100   : > { %v2353_v16 = vadd.f32 %v2352_v6, %v2304_v5  ;;  %v2258_v17 = vadd.f32 %v2257_v12, %v4193_v11  ;;  %v910_v11 = vld [vmem:[#allocation2 + $0x100] sm:$0x8]  ;;  %v3016_v6 = vld [vmem:[#allocation3 + $0xb0] sm:$0xf]  ;;  %v1113_v12 = vsel %vm4053_vm5, %v2906_v2, %v1112_v3 }
 0x101   : > { %v2404_v18 = vpop.f32.mrf.mxu0  ;;  %v2898_v44 = vrot.slane %v910_v11, 11  ;;  %v3017_v23 = vor.u32 %v3521_v8, %v3016_v6  ;;  %1162 = vst [vmem:[#allocation3 + $0x140] sm:$0xf] %v1113_v12  ;;  %v814_v11 = vrot.slane %v745_v38, 6  ;;  %v986_v6 = vrot.slane %v915_v52, 7 }
 0x102   : > { %2452 = vmatmul.bf16.gmra.mxu1 %v2969_v9  ;;  %2501 = vmatmul.bf16.gmra.mxu2 %v2973_v10  ;;  %v4236_v21 = vadd.f32 %v2401_v36, %v2353_v16  ;;  %v980_v9 = vsel %vm4047_vm2, %v978_v56, %v979_v59  ;;  %v1115_v10 = vrot.slane %v1048_v0, 6  ;;  %v876_v56 = vld [vmem:[#allocation2 + $0x110] sm:$0xf]  ;;  %v877_v59 = vld [vmem:[#allocation2 + $0x114] sm:$0xf] }
 0x103   : > { %v977_v63 = vsel %vm4047_vm2, %v2898_v44, %v976_v31  ;;  %1027 = vst [vmem:[#allocation3 + $0x160] sm:$0xf] %v980_v9  ;;  %v983_v44 = vrot.slane %v914_v39, 7  ;;  %v816_v49 = vrot.slane %v814_v11, 4  ;;  %v815_v55 = vsel %vm4053_vm5, %v2891_v48, %v814_v11  ;;  %v3529_v0 = vld [vmem:[#allocation3 + $0x110] sm:$0xf0] }
 0x104   : > { %2550 = vmatmul.bf16.gmra.mxu3 %v2977_v13  ;;  %2599 = vmatmul.bf16.gmra.mxu0 %v2981_v14  ;;  %v1114_v13 = vrot.slane %v1112_v3, 4  ;;  %1026 = vst [vmem:[#allocation3 + $0x13c] sm:$0xf] %v977_v63  ;;  %v3044_v63 = vld [vmem:[#allocation3 + $0xf0] sm:$0xf] }
 0x105   : > { %v2306_v27 = vpop.f32.mrf.mxu2  ;;  %v818_v2 = vsel %vm4053_vm5, %v816_v49, %v817_v51  ;;  %859 = vst [vmem:[#allocation3 + $0x17c] sm:$0xf] %v815_v55  ;;  %v985_v3 = vrot.slane %v983_v44, 4  ;;  %v1050_v9 = vld [vmem:[#allocation2 + $0x118] sm:$0xf]  ;;  %v3045_v39 = vor.u32 %v3529_v0, %v3044_v63 }
 0x106   : > { %v2307_v33 = vadd.f32 %v2306_v27, %v2258_v17  ;;  %860 = vst [vmem:[#allocation3 + $0x1a0] sm:$0xf] %v818_v2  ;;  %v1051_v12 = vld [vmem:[#allocation2 + $0x11c] sm:$0x3]  ;;  %v748_v48 = vld [vmem:[#allocation2 + $0xc8] sm:$0xf] }
 0x107   : > { %v2355_v34 = vpop.f32.mrf.mxu3  ;;  %v2259_v40 = vpop.f32.mrf.mxu1  ;;  %892 = vst [vmem:[#allocation3 + $0x180] sm:$0xf] %v876_v56  ;;  %v917_v49 = vld [vmem:[#allocation2 + $0x124] sm:$0xf]  ;;  %v749_v52 = vld [vmem:[#allocation2 + $0xcc] sm:$0x3] }
 0x108   : > { %v2356_v36 = vadd.f32 %v2355_v34, %v2307_v33  ;;  %v2260_v46 = vadd.f32 %v2259_v40, %v4201_v28  ;;  %v3010_v28 = vld [vmem:[#allocation3 + $0xcc] sm:$0xf0]  ;;  %893 = vst [vmem:[#allocation3 + $0x1a4] sm:$0xf] %v877_v59  ;;  %v747_v51 = vld [vmem:[#allocation2 + $0xc4] sm:$0xc] }
 0x109   : > { %v2406_v47 = vpop.f32.mrf.mxu0  ;;  %v3013_v27 = vor.u32 %v3516_v62, %v3010_v28  ;;  %v3524_v62 = vld [vmem:[#allocation3 + $0xec] sm:$0xf]  ;;  %v3038_v28 = vld [vmem:[#allocation3 + $0x10c] sm:$0xf0]  ;;  %v2892_v55 = vrot.slane %v747_v51, 10 }
 0x10a   : > { %v4245_v5 = vadd.f32 %v2404_v18, %v2356_v36  ;;  %v1116_v18 = vsel %vm4053_vm5, %v1114_v13, %v1115_v10  ;;  %v3525_v10 = vld [vmem:[#allocation3 + $0xf4] sm:$0xf]  ;;  %v2907_v13 = vrot.slane %v1049_v60, 10  ;;  %v3041_v38 = vor.u32 %v3524_v62, %v3038_v28  ;;  %v918_v62 = vld [vmem:[#allocation2 + $0x128] sm:$0x7] }
 0x10b   : > { %1163 = vst [vmem:[#allocation3 + $0x164] sm:$0xf] %v1116_v18  ;;  %v3530_v18 = vld [vmem:[#allocation3 + $0x118] sm:$0xf0]  ;;  %v824_v60 = vrot.slane %v749_v52, 6 }
 0x10d   : > { %v2308_v14 = vpop.f32.mrf.mxu2 }
 0x10e   : > { %v2309_v16 = vadd.f32 %v2308_v14, %v2260_v46  ;;  %v1119_v14 = vrot.slane %v1050_v9, 6  ;;  %v1052_v9 = vld [vmem:[#allocation2 + $0x124] sm:$0xc] }
 0x10f   : > { %v2357_v17 = vpop.f32.mrf.mxu3  ;;  %v2262_v26 = vpop.f32.mrf.mxu1 }
 0x110   : > { %v2358_v30 = vadd.f32 %v2357_v17, %v2309_v16  ;;  %v2263_v31 = vadd.f32 %v2262_v26, %v4161_v20  ;;  %v913_v20 = vld [vmem:[#allocation2 + $0x110] sm:$0x8]  ;;  %v3052_v17 = vld [vmem:[#allocation3 + $0xf8] sm:$0xf]  ;;  %v1120_v26 = vsel %vm4053_vm5, %v2907_v13, %v1119_v14 }
 0x111   : > { %v2409_v33 = vpop.f32.mrf.mxu0  ;;  %v2899_v41 = vrot.slane %v913_v20, 11  ;;  %v3053_v42 = vor.u32 %v3530_v18, %v3052_v17  ;;  %1164 = vst [vmem:[#allocation3 + $0x188] sm:$0xf] %v1120_v26  ;;  %v821_v20 = vrot.slane %v748_v48, 6  ;;  %v993_v17 = vrot.slane %v918_v62, 7 }
 0x112   : > { %2457 = vmatmul.bf16.gmra.mxu1 %v3005_v22  ;;  %2506 = vmatmul.bf16.gmra.mxu2 %v3009_v24  ;;  %v4254_v34 = vadd.f32 %v2406_v47, %v2358_v30  ;;  %v987_v22 = vsel %vm4047_vm2, %v985_v3, %v986_v6  ;;  %v1122_v24 = vrot.slane %v1051_v12, 6  ;;  %v878_v3 = vld [vmem:[#allocation2 + $0x120] sm:$0xf]  ;;  %v879_v6 = vld [vmem:[#allocation2 + $0x124] sm:$0xf] }
 0x113   : > { %v984_v8 = vsel %vm4047_vm2, %v2899_v41, %v983_v44  ;;  %1029 = vst [vmem:[#allocation3 + $0x1a8] sm:$0xf] %v987_v22  ;;  %v990_v41 = vrot.slane %v917_v49, 7  ;;  %v823_v56 = vrot.slane %v821_v20, 4  ;;  %v822_v2 = vsel %vm4053_vm5, %v2892_v55, %v821_v20  ;;  %v3538_v12 = vld [vmem:[#allocation3 + $0x158] sm:$0xf0] }
 0x114   : > { %2555 = vmatmul.bf16.gmra.mxu3 %v3013_v27  ;;  %2604 = vmatmul.bf16.gmra.mxu0 %v3017_v23  ;;  %v1121_v27 = vrot.slane %v1119_v14, 4  ;;  %1028 = vst [vmem:[#allocation3 + $0x184] sm:$0xf] %v984_v8  ;;  %v3080_v8 = vld [vmem:[#allocation3 + $0x138] sm:$0xf] }
 0x115   : > { %v2311_v40 = vpop.f32.mrf.mxu2  ;;  %v825_v13 = vsel %vm4053_vm5, %v823_v56, %v824_v60  ;;  %861 = vst [vmem:[#allocation3 + $0x1c4] sm:$0xf] %v822_v2  ;;  %v992_v14 = vrot.slane %v990_v41, 4  ;;  %v1053_v22 = vld [vmem:[#allocation2 + $0x128] sm:$0xf]  ;;  %v3081_v49 = vor.u32 %v3538_v12, %v3080_v8 }
 0x116   : > { %v2312_v36 = vadd.f32 %v2311_v40, %v2263_v31  ;;  %862 = vst [vmem:[#allocation3 + $0x1e8] sm:$0xf] %v825_v13  ;;  %v1054_v26 = vld [vmem:[#allocation2 + $0x12c] sm:$0x3]  ;;  %v920_v55 = vld [vmem:[#allocation2 + $0x134] sm:$0xf] }
 0x117   : > { %v2360_v46 = vpop.f32.mrf.mxu3  ;;  %v2264_v50 = vpop.f32.mrf.mxu1  ;;  %894 = vst [vmem:[#allocation3 + $0x1c8] sm:$0xf] %v878_v3  ;;  %v750_v60 = vld [vmem:[#allocation2 + $0xd4] sm:$0xc]  ;;  %v752_v62 = vld [vmem:[#allocation2 + $0xdc] sm:$0x3] }
 0x118   : > { %v2361_v47 = vadd.f32 %v2360_v46, %v2312_v36  ;;  %v2265_v53 = vadd.f32 %v2264_v50, %v4171_v37  ;;  %v3046_v37 = vld [vmem:[#allocation3 + $0x114] sm:$0xf0]  ;;  %895 = vst [vmem:[#allocation3 + $0x1ec] sm:$0xf] %v879_v6  ;;  %v2893_v2 = vrot.slane %v750_v60, 10 }
 0x119   : > { %v2411_v54 = vpop.f32.mrf.mxu0  ;;  %v3049_v40 = vor.u32 %v3525_v10, %v3046_v37  ;;  %v3533_v10 = vld [vmem:[#allocation3 + $0x134] sm:$0xf]  ;;  %v3074_v37 = vld [vmem:[#allocation3 + $0x154] sm:$0xf0]  ;;  %v919_v6 = vld [vmem:[#allocation2 + $0x130] sm:$0x8] }
 0x11a   : > { %v4263_v16 = vadd.f32 %v2409_v33, %v2361_v47  ;;  %v1123_v33 = vsel %vm4053_vm5, %v1121_v27, %v1122_v24  ;;  %v3534_v24 = vld [vmem:[#allocation3 + $0x13c] sm:$0xf]  ;;  %v2908_v27 = vrot.slane %v1052_v9, 10  ;;  %v3077_v48 = vor.u32 %v3533_v10, %v3074_v37 }
 0x11b   : > { %1165 = vst [vmem:[#allocation3 + $0x1ac] sm:$0xf] %v1123_v33  ;;  %v3539_v33 = vld [vmem:[#allocation3 + $0x160] sm:$0xf0]  ;;  %v831_v10 = vrot.slane %v752_v62, 6  ;;  %v2901_v37 = vrot.slane %v919_v6, 11 }
 0x11d   : > { %v2313_v23 = vpop.f32.mrf.mxu2 }
 0x11e   : > { %v2314_v30 = vadd.f32 %v2313_v23, %v2265_v53  ;;  %v1126_v23 = vrot.slane %v1053_v22, 6  ;;  %v3542_v22 = vld [vmem:[#allocation3 + $0x17c] sm:$0xf] }
 0x11f   : > { %v2362_v31 = vpop.f32.mrf.mxu3  ;;  %v2267_v11 = vpop.f32.mrf.mxu1 }
 0x120   : > { %v2363_v43 = vadd.f32 %v2362_v31, %v2314_v30  ;;  %v2268_v44 = vadd.f32 %v2267_v11, %v4189_v7  ;;  %v916_v7 = vld [vmem:[#allocation2 + $0x120] sm:$0x8]  ;;  %v1127_v11 = vsel %vm4053_vm5, %v2908_v27, %v1126_v23 }
 0x121   : > { %v2414_v36 = vpop.f32.mrf.mxu0  ;;  %v2900_v28 = vrot.slane %v916_v7, 11  ;;  %v3088_v31 = vld [vmem:[#allocation3 + $0x140] sm:$0xf]  ;;  %1166 = vst [vmem:[#allocation3 + $0x1d0] sm:$0xf] %v1127_v11 }
 0x122   : > { %2462 = vmatmul.bf16.gmra.mxu1 %v3041_v38  ;;  %2511 = vmatmul.bf16.gmra.mxu2 %v3045_v39  ;;  %v4272_v46 = vadd.f32 %v2411_v54, %v2363_v43  ;;  %v994_v38 = vsel %vm4047_vm2, %v992_v14, %v993_v17  ;;  %v1129_v39 = vrot.slane %v1054_v26, 6  ;;  %v3089_v51 = vor.u32 %v3539_v33, %v3088_v31  ;;  %v881_v14 = vld [vmem:[#allocation2 + $0x134] sm:$0xf]  ;;  %v1056_v31 = vld [vmem:[#allocation2 + $0x138] sm:$0xf] }
 0x123   : > { %v991_v18 = vsel %vm4047_vm2, %v2900_v28, %v990_v41  ;;  %1031 = vst [vmem:[#allocation3 + $0x1f0] sm:$0xf] %v994_v38  ;;  %v997_v28 = vrot.slane %v920_v55, 7  ;;  %v1055_v17 = vld [vmem:[#allocation2 + $0x134] sm:$0xc] }
 0x124   : > { %2560 = vmatmul.bf16.gmra.mxu3 %v3049_v40  ;;  %2609 = vmatmul.bf16.gmra.mxu0 %v3053_v42  ;;  %v1128_v40 = vrot.slane %v1126_v23, 4  ;;  %1030 = vst [vmem:[#allocation3 + $0x1cc] sm:$0xf] %v991_v18  ;;  %v3547_v18 = vld [vmem:[#allocation3 + $0x1a0] sm:$0xf0] }
 0x125   : > { %v2316_v50 = vpop.f32.mrf.mxu2  ;;  %v999_v27 = vrot.slane %v997_v28, 4  ;;  %v3543_v38 = vld [vmem:[#allocation3 + $0x184] sm:$0xf]  ;;  %v998_v33 = vsel %vm4047_vm2, %v2901_v37, %v997_v28  ;;  %v1057_v11 = vld [vmem:[#allocation2 + $0x13c] sm:$0x3] }
 0x126   : > { %v2317_v47 = vadd.f32 %v2316_v50, %v2268_v44  ;;  %897 = vst [vmem:[#allocation3 + $0x234] sm:$0xf] %v881_v14 }
 0x127   : > { %v2365_v53 = vpop.f32.mrf.mxu3  ;;  %v2269_v59 = vpop.f32.mrf.mxu1  ;;  %1032 = vst [vmem:[#allocation3 + $0x214] sm:$0xf] %v998_v33 }
 0x128   : > { %v2366_v54 = vadd.f32 %v2365_v53, %v2317_v47  ;;  %v2270_v63 = vadd.f32 %v2269_v59, %v4199_v25  ;;  %v3082_v25 = vld [vmem:[#allocation3 + $0x15c] sm:$0xf0]  ;;  %v751_v53 = vld [vmem:[#allocation2 + $0xd8] sm:$0xf] }
 0x129   : > { %v2416_v0 = vpop.f32.mrf.mxu0  ;;  %v3085_v50 = vor.u32 %v3534_v24, %v3082_v25  ;;  %v828_v7 = vrot.slane %v751_v53, 6  ;;  %v3110_v24 = vld [vmem:[#allocation3 + $0x19c] sm:$0xf0] }
 0x12a   : > { %v4281_v30 = vadd.f32 %v2414_v36, %v2366_v54  ;;  %v1130_v36 = vsel %vm4053_vm5, %v1128_v40, %v1129_v39  ;;  %v3116_v25 = vld [vmem:[#allocation3 + $0x180] sm:$0xf]  ;;  %v3118_v39 = vld [vmem:[#allocation3 + $0x1a4] sm:$0xf0]  ;;  %v2909_v40 = vrot.slane %v1055_v17, 10 }
 0x12b   : > { %1167 = vst [vmem:[#allocation3 + $0x1f4] sm:$0xf] %v1130_v36  ;;  %v830_v3 = vrot.slane %v828_v7, 4  ;;  %v829_v13 = vsel %vm4053_vm5, %v2893_v2, %v828_v7  ;;  %v3154_v14 = vld [vmem:[#allocation3 + $0x1ec] sm:$0xf0] }
 0x12c   : > { %863 = vst [vmem:[#allocation3 + $0x20c] sm:$0xf] %v829_v13  ;;  %v3556_v13 = vld [vmem:[#allocation3 + $0x1e8] sm:$0xf0]  ;;  %v3160_v17 = vld [vmem:[#allocation3 + $0x1d0] sm:$0xf] }
 0x12d   : > { %v2318_v42 = vpop.f32.mrf.mxu2  ;;  %v832_v26 = vsel %vm4053_vm5, %v830_v3, %v831_v10  ;;  %v3551_v10 = vld [vmem:[#allocation3 + $0x1c4] sm:$0xf] }
 0x12e   : > { %v2319_v43 = vadd.f32 %v2318_v42, %v2270_v63  ;;  %864 = vst [vmem:[#allocation3 + $0x230] sm:$0xf] %v832_v26  ;;  %v1133_v42 = vrot.slane %v1056_v31, 6 }
 0x12f   : > { %v2367_v44 = vpop.f32.mrf.mxu3  ;;  %v2272_v20 = vpop.f32.mrf.mxu1 }
 0x130   : > { %v2368_v52 = vadd.f32 %v2367_v44, %v2319_v43  ;;  %v2273_v56 = vadd.f32 %v2272_v20, %v4167_v29  ;;  %v880_v29 = vld [vmem:[#allocation2 + $0x130] sm:$0xf]  ;;  %v3124_v44 = vld [vmem:[#allocation3 + $0x188] sm:$0xf]  ;;  %v3548_v20 = vld [vmem:[#allocation3 + $0x1a8] sm:$0xf0] }
 0x131   : > { %v2419_v41 = vpop.f32.mrf.mxu0  ;;  %896 = vst [vmem:[#allocation3 + $0x210] sm:$0xf] %v880_v29  ;;  %v3125_v60 = vor.u32 %v3548_v20, %v3124_v44  ;;  %v3552_v29 = vld [vmem:[#allocation3 + $0x1cc] sm:$0xf] }
 0x132   : > { %2467 = vmatmul.bf16.gmra.mxu1 %v3077_v48  ;;  %2516 = vmatmul.bf16.gmra.mxu2 %v3081_v49  ;;  %v4289_v47 = vadd.f32 %v2416_v0, %v2368_v52  ;;  %v921_v0 = vld [vmem:[#allocation2 + $0x138] sm:$0x7]  ;;  %v1136_v49 = vrot.slane %v1057_v11, 6 }
 0x133   : > { %v1000_v23 = vrot.slane %v921_v0, 7  ;;  %v3146_v0 = vld [vmem:[#allocation3 + $0x1e4] sm:$0xf0] }
 0x134   : > { %2565 = vmatmul.bf16.gmra.mxu3 %v3085_v50  ;;  %2614 = vmatmul.bf16.gmra.mxu0 %v3089_v51  ;;  %v1134_v50 = vsel %vm4053_vm5, %v2909_v40, %v1133_v42  ;;  %v1135_v51 = vrot.slane %v1133_v42, 4 }
 0x135   : > { %v2321_v59 = vpop.f32.mrf.mxu2  ;;  %v1001_v48 = vsel %vm4047_vm2, %v999_v27, %v1000_v23  ;;  %1168 = vst [vmem:[#allocation3 + $0x218] sm:$0xf] %v1134_v50  ;;  %v3157_v23 = vor.u32 %v3552_v29, %v3154_v14  ;;  %v3182_v20 = vld [vmem:[#allocation3 + $0x22c] sm:$0xf0] }
 0x136   : > { %v2322_v54 = vadd.f32 %v2321_v59, %v2273_v56  ;;  %v3117_v56 = vor.u32 %v3547_v18, %v3116_v25  ;;  %1033 = vst [vmem:[#allocation3 + $0x238] sm:$0xf] %v1001_v48  ;;  %v1137_v35 = vsel %vm4053_vm5, %v1135_v51, %v1136_v49  ;;  %v3121_v59 = vor.u32 %v3543_v38, %v3118_v39 }
 0x137   : > { %v2370_v63 = vpop.f32.mrf.mxu3  ;;  %v2274_v9 = vpop.f32.mrf.mxu1  ;;  %1169 = vst [vmem:[#allocation3 + $0x23c] sm:$0xf] %v1137_v35  ;;  %v3149_v18 = vor.u32 %v3551_v10, %v3146_v0 }
 0x138   : > { %v2371_v8 = vadd.f32 %v2370_v63, %v2322_v54  ;;  %v2275_v36 = vadd.f32 %v2274_v9, %v4183_v1  ;;  %v3188_v51 = vld [vmem:[#allocation3 + $0x210] sm:$0xf] }
 0x139   : > { %v2421_v12 = vpop.f32.mrf.mxu0 }
 0x13a   : > { %v4298_v43 = vadd.f32 %v2419_v41, %v2371_v8  ;;  %v3113_v41 = vor.u32 %v3542_v22, %v3110_v24  ;;  %v3152_v8 = vld [vmem:[#allocation3 + $0x1c8] sm:$0xf]  ;;  %v3557_v22 = vld [vmem:[#allocation3 + $0x1f0] sm:$0xf0] }
 0x13b   : > { %v3153_v26 = vor.u32 %v3556_v13, %v3152_v8  ;;  %v3161_v31 = vor.u32 %v3557_v22, %v3160_v17 }
 0x13d   : > { %v2323_v52 = vpop.f32.mrf.mxu2 }
 0x13e   : > { %v2324_v53 = vadd.f32 %v2323_v52, %v2275_v36  ;;  %v3560_v36 = vld [vmem:[#allocation3 + $0x20c] sm:$0xf]  ;;  %v3565_v52 = vld [vmem:[#allocation3 + $0x230] sm:$0xf0]  ;;  %v3566_v35 = vld [vmem:[#allocation3 + $0x238] sm:$0xf0] }
 0x13f   : > { %v2372_v55 = vpop.f32.mrf.mxu3  ;;  %v2277_v7 = vpop.f32.mrf.mxu1 }
 0x140   : > { %v2373_v1 = vadd.f32 %v2372_v55, %v2324_v53  ;;  %v2278_v54 = vadd.f32 %v2277_v7, %v4195_v15  ;;  %v3561_v53 = vld [vmem:[#allocation3 + $0x214] sm:$0xf] }
 0x141   : > { %v2424_v62 = vpop.f32.mrf.mxu0 }
 0x142   : > { %2472 = vmatmul.bf16.gmra.mxu1 %v3113_v41  ;;  %2521 = vmatmul.bf16.gmra.mxu2 %v3117_v56  ;;  %v4307_v28 = vadd.f32 %v2421_v12, %v2373_v1  ;;  %v3190_v41 = vld [vmem:[#allocation3 + $0x234] sm:$0xf0]  ;;  %v3189_v1 = vor.u32 %v3565_v52, %v3188_v51 }
 0x143   : > { %v3196_v56 = vld [vmem:[#allocation3 + $0x218] sm:$0xf] }
 0x144   : > { %2570 = vmatmul.bf16.gmra.mxu3 %v3121_v59  ;;  %2619 = vmatmul.bf16.gmra.mxu0 %v3125_v60  ;;  %v3185_v60 = vor.u32 %v3560_v36, %v3182_v20 }
 0x145   : > { %v2326_v63 = vpop.f32.mrf.mxu2 }
 0x146   : > { %v2327_v2 = vadd.f32 %v2326_v63, %v2278_v54  ;;  %v3193_v54 = vor.u32 %v3561_v53, %v3190_v41  ;;  %v3197_v63 = vor.u32 %v3566_v35, %v3196_v56 }
 0x147   : > { %v2375_v3 = vpop.f32.mrf.mxu3  ;;  %v2279_v45 = vpop.f32.mrf.mxu1 }
 0x148   : > { %v2376_v6 = vadd.f32 %v2375_v3, %v2327_v2  ;;  %v2280_v12 = vadd.f32 %v2279_v45, %v4211_v58 }
 0x149   : > { %v2426_v9 = vpop.f32.mrf.mxu0 }
 0x14a   : > { %v4310_v37 = vadd.f32 %v2424_v62, %v2376_v6 }
 0x14d   : > { %v2328_v24 = vpop.f32.mrf.mxu2 }
 0x14e   : > { %v2329_v15 = vadd.f32 %v2328_v24, %v2280_v12 }
 0x14f   : > { %v2377_v25 = vpop.f32.mrf.mxu3  ;;  %v2282_v27 = vpop.f32.mrf.mxu1 }
 0x150   : > { %v2378_v38 = vadd.f32 %v2377_v25, %v2329_v15  ;;  %v2283_v58 = vadd.f32 %v2282_v27, %v4169_v32 }
 0x151   : > { %v2429_v39 = vpop.f32.mrf.mxu0 }
 0x152   : > { %2477 = vmatmul.bf16.gmra.mxu1 %v3149_v18  ;;  %2526 = vmatmul.bf16.gmra.mxu2 %v3153_v26  ;;  %v4313_v33 = vadd.f32 %v2426_v9, %v2378_v38 }
 0x154   : > { %2575 = vmatmul.bf16.gmra.mxu3 %v3157_v23  ;;  %2624 = vmatmul.bf16.gmra.mxu0 %v3161_v31 }
 0x155   : > { %v2331_v11 = vpop.f32.mrf.mxu2 }
 0x156   : > { %v2332_v40 = vadd.f32 %v2331_v11, %v2283_v58  ;;  %v4336_v11 = vld [vmem:[%s4450_s3] ss:$0 sm:$0xff] }
 0x157   : > { %v2380_v42 = vpop.f32.mrf.mxu3  ;;  %v2284_v44 = vpop.f32.mrf.mxu1 }
 0x158   : > { %v2381_v48 = vadd.f32 %v2380_v42, %v2332_v40  ;;  %v2285_v55 = vadd.f32 %v2284_v44, %v4187_v4 }
 0x159   : > { %v2431_v49 = vpop.f32.mrf.mxu0 }
 0x15a   : > { %v4316_v50 = vadd.f32 %v2429_v39, %v2381_v48 }
 0x15d   : > { %v2333_v7 = vpop.f32.mrf.mxu2 }
 0x15e   : > { %v2334_v32 = vadd.f32 %v2333_v7, %v2285_v55 }
 0x15f   : > { %v2382_v59 = vpop.f32.mrf.mxu3  ;;  %v2287_v62 = vpop.f32.mrf.mxu1 }
 0x160   : > { %v2383_v2 = vadd.f32 %v2382_v59, %v2334_v32  ;;  %v2288_v4 = vadd.f32 %v2287_v62, %v4197_v19 }
 0x161   : > { %v2434_v3 = vpop.f32.mrf.mxu0 }
 0x162   : > { %2482 = vmatmul.bf16.gmra.mxu1 %v3185_v60  ;;  %2531 = vmatmul.bf16.gmra.mxu2 %v3189_v1  ;;  %v4319_v45 = vadd.f32 %v2431_v49, %v2383_v2 }
 0x164   : > { %2580 = vmatmul.bf16.gmra.mxu3 %v3193_v54  ;;  %2629 = vmatmul.bf16.gmra.mxu0 %v3197_v63 }
 0x165   : > { %v2336_v6 = vpop.f32.mrf.mxu2 }
 0x166   : > { %v2337_v9 = vadd.f32 %v2336_v6, %v2288_v4 }
 0x167   : > { %v2385_v10 = vpop.f32.mrf.mxu3  ;;  %v2289_v0 = vpop.f32.mrf.mxu1 }
 0x168   : > { %v2386_v8 = vadd.f32 %v2385_v10, %v2337_v9  ;;  %v2290_v12 = vadd.f32 %v2289_v0, %v4215_v61  ;;  %v4331_v61 = vld [vmem:[%s4449_s2] ss:$0 sm:$0xff] }
 0x169   : > { %v2436_v13 = vpop.f32.mrf.mxu0 }
 0x16a   : > { %v4322_v29 = vadd.f32 %v2434_v3, %v2386_v8 }
 0x16d   : > { %v2338_v14 = vpop.f32.mrf.mxu2 }
 0x16e   : > { %v2339_v17 = vadd.f32 %v2338_v14, %v2290_v12 }
 0x16f   : > { %v2387_v22 = vpop.f32.mrf.mxu3  ;;  %v2448_v24 = vpop.f32.mrf.mxu1 }
 0x170   : > { %v2388_v15 = vadd.f32 %v2387_v22, %v2339_v17  ;;  %v2449_v19 = vadd.f32 %v2448_v24, %v4227_v57 }
 0x171   : > { %v2595_v25 = vpop.f32.mrf.mxu0 }
 0x172   : > { %v4325_v18 = vadd.f32 %v2436_v13, %v2388_v15 }
 0x175   : > { %v2497_v26 = vpop.f32.mrf.mxu2 }
 0x176   : > { %v2498_v27 = vadd.f32 %v2497_v26, %v2449_v19 }
 0x177   : > { %v2546_v23 = vpop.f32.mrf.mxu3  ;;  %v2450_v31 = vpop.f32.mrf.mxu1 }
 0x178   : > { %v2547_v38 = vadd.f32 %v2546_v23, %v2498_v27  ;;  %v2451_v40 = vadd.f32 %v2450_v31, %v4236_v21 }
 0x179   : > { %v2597_v39 = vpop.f32.mrf.mxu0 }
 0x17a   : > { %v2596_v58 = vadd.f32 %v2595_v25, %v2547_v38 }
 0x17c   : > { %v2639_v57 = vmul.f32 %v4331_v61, %v2596_v58 }
 0x17d   : > { %v2499_v42 = vpop.f32.mrf.mxu2 }
 0x17e   : > { %v2659_v44 = vadd.f32 %v4336_v11, %v2639_v57  ;;  %v2500_v48 = vadd.f32 %v2499_v42, %v2451_v40 }
 0x17f   : > { %v2548_v49 = vpop.f32.mrf.mxu3  ;;  %v2453_v36 = vpop.f32.mrf.mxu1 }
 0x180   : > { %v2675_v20 = vmax.f32 %v2659_v44, 0.0  ;;  %v2549_v51 = vadd.f32 %v2548_v49, %v2500_v48  ;;  %v2454_v41 = vadd.f32 %v2453_v36, %v4245_v5 }
 0x181   : > { %v2600_v52 = vpop.f32.mrf.mxu0 }
 0x182   : > { %2691 = vst [vmem:[%s4045_s6] sm:$0xff] %v2675_v20  ;;  %v2598_v53 = vadd.f32 %v2597_v39, %v2549_v51 }
 0x184   : > { %v2640_v55 = vmul.f32 %v4331_v61, %v2598_v53 }
 0x185   : > { %v2502_v56 = vpop.f32.mrf.mxu2 }
 0x186   : > { %v2660_v35 = vadd.f32 %v4336_v11, %v2640_v55  ;;  %v2503_v21 = vadd.f32 %v2502_v56, %v2454_v41 }
 0x187   : > { %v2551_v7 = vpop.f32.mrf.mxu3  ;;  %v2455_v32 = vpop.f32.mrf.mxu1 }
 0x188   : > { %v2676_v59 = vmax.f32 %v2660_v35, 0.0  ;;  %v2552_v60 = vadd.f32 %v2551_v7, %v2503_v21  ;;  %v2456_v63 = vadd.f32 %v2455_v32, %v4254_v34 }
 0x189   : > { %v2602_v1 = vpop.f32.mrf.mxu0 }
 0x18a   : > { %2692 = vst [vmem:[%s4045_s6 + $0x8] sm:$0xff] %v2676_v59  ;;  %v2601_v62 = vadd.f32 %v2600_v52, %v2552_v60 }
 0x18c   : > { %v2641_v54 = vmul.f32 %v4331_v61, %v2601_v62 }
 0x18d   : > { %v2504_v2 = vpop.f32.mrf.mxu2 }
 0x18e   : > { %v2661_v3 = vadd.f32 %v4336_v11, %v2641_v54  ;;  %v2505_v5 = vadd.f32 %v2504_v2, %v2456_v63 }
 0x18f   : > { %v2553_v4 = vpop.f32.mrf.mxu3  ;;  %v2458_v6 = vpop.f32.mrf.mxu1 }
 0x190   : > { %v2677_v9 = vmax.f32 %v2661_v3, 0.0  ;;  %v2554_v10 = vadd.f32 %v2553_v4, %v2505_v5  ;;  %v2459_v12 = vadd.f32 %v2458_v6, %v4263_v16 }
 0x191   : > { %v2605_v0 = vpop.f32.mrf.mxu0 }
 0x192   : > { %2693 = vst [vmem:[%s4045_s6 + $0x10] sm:$0xff] %v2677_v9  ;;  %v2603_v8 = vadd.f32 %v2602_v1, %v2554_v10 }
 0x194   : > { %v2642_v13 = vmul.f32 %v4331_v61, %v2603_v8 }
 0x195   : > { %v2507_v14 = vpop.f32.mrf.mxu2 }
 0x196   : > { %v2662_v17 = vadd.f32 %v4336_v11, %v2642_v13  ;;  %v2508_v34 = vadd.f32 %v2507_v14, %v2459_v12 }
 0x197   : > { %v2556_v22 = vpop.f32.mrf.mxu3  ;;  %v2460_v24 = vpop.f32.mrf.mxu1 }
 0x198   : > { %v2678_v15 = vmax.f32 %v2662_v17, 0.0  ;;  %v2557_v25 = vadd.f32 %v2556_v22, %v2508_v34  ;;  %v2461_v23 = vadd.f32 %v2460_v24, %v4272_v46 }
 0x199   : > { %v2607_v19 = vpop.f32.mrf.mxu0 }
 0x19a   : > { %2694 = vst [vmem:[%s4045_s6 + $0x18] sm:$0xff] %v2678_v15  ;;  %v2606_v26 = vadd.f32 %v2605_v0, %v2557_v25 }
 0x19c   : > { %v2643_v27 = vmul.f32 %v4331_v61, %v2606_v26 }
 0x19d   : > { %v2509_v31 = vpop.f32.mrf.mxu2 }
 0x19e   : > { %v2663_v38 = vadd.f32 %v4336_v11, %v2643_v27  ;;  %v2510_v16 = vadd.f32 %v2509_v31, %v2461_v23 }
 0x19f   : > { %v2558_v39 = vpop.f32.mrf.mxu3  ;;  %v2463_v58 = vpop.f32.mrf.mxu1 }
 0x1a0   : > { %v2679_v57 = vmax.f32 %v2663_v38, 0.0  ;;  %v2559_v40 = vadd.f32 %v2558_v39, %v2510_v16  ;;  %v2464_v49 = vadd.f32 %v2463_v58, %v4281_v30 }
 0x1a1   : > { %v2610_v42 = vpop.f32.mrf.mxu0 }
 0x1a2   : > { %2695 = vst [vmem:[%s4045_s6 + $0x20] sm:$0xff] %v2679_v57  ;;  %v2608_v44 = vadd.f32 %v2607_v19, %v2559_v40 }
 0x1a4   : > { %v2644_v48 = vmul.f32 %v4331_v61, %v2608_v44 }
 0x1a5   : > { %v2512_v36 = vpop.f32.mrf.mxu2 }
 0x1a6   : > { %v2664_v20 = vadd.f32 %v4336_v11, %v2644_v48  ;;  %v2513_v46 = vadd.f32 %v2512_v36, %v2464_v49 }
 0x1a7   : > { %v2561_v51 = vpop.f32.mrf.mxu3  ;;  %v2465_v52 = vpop.f32.mrf.mxu1 }
 0x1a8   : > { %v2680_v53 = vmax.f32 %v2664_v20, 0.0  ;;  %v2562_v55 = vadd.f32 %v2561_v51, %v2513_v46  ;;  %v2466_v21 = vadd.f32 %v2465_v52, %v4289_v47 }
 0x1a9   : > { %v2612_v41 = vpop.f32.mrf.mxu0 }
 0x1aa   : > { %2696 = vst [vmem:[%s4045_s6 + $0x28] sm:$0xff] %v2680_v53  ;;  %v2611_v56 = vadd.f32 %v2610_v42, %v2562_v55 }
 0x1ac   : > { %v2645_v35 = vmul.f32 %v4331_v61, %v2611_v56 }
 0x1ad   : > { %v2514_v7 = vpop.f32.mrf.mxu2 }
 0x1ae   : > { %v2665_v32 = vadd.f32 %v4336_v11, %v2645_v35  ;;  %v2515_v30 = vadd.f32 %v2514_v7, %v2466_v21 }
 0x1af   : > { %v2563_v59 = vpop.f32.mrf.mxu3  ;;  %v2468_v60 = vpop.f32.mrf.mxu1 }
 0x1b0   : > { %v2681_v1 = vmax.f32 %v2665_v32, 0.0  ;;  %v2564_v62 = vadd.f32 %v2563_v59, %v2515_v30  ;;  %v2469_v3 = vadd.f32 %v2468_v60, %v4298_v43 }
 0x1b1   : > { %v2615_v54 = vpop.f32.mrf.mxu0 }
 0x1b2   : > { %2697 = vst [vmem:[%s4045_s6 + $0x30] sm:$0xff] %v2681_v1  ;;  %v2613_v63 = vadd.f32 %v2612_v41, %v2564_v62 }
 0x1b4   : > { %v2646_v2 = vmul.f32 %v4331_v61, %v2613_v63 }
 0x1b5   : > { %v2517_v5 = vpop.f32.mrf.mxu2 }
 0x1b6   : > { %v2666_v4 = vadd.f32 %v4336_v11, %v2646_v2  ;;  %v2518_v47 = vadd.f32 %v2517_v5, %v2469_v3 }
 0x1b7   : > { %v2566_v6 = vpop.f32.mrf.mxu3  ;;  %v2470_v9 = vpop.f32.mrf.mxu1 }
 0x1b8   : > { %v2682_v10 = vmax.f32 %v2666_v4, 0.0  ;;  %v2567_v0 = vadd.f32 %v2566_v6, %v2518_v47  ;;  %v2471_v14 = vadd.f32 %v2470_v9, %v4307_v28 }
 0x1b9   : > { %v2617_v8 = vpop.f32.mrf.mxu0 }
 0x1ba   : > { %2698 = vst [vmem:[%s4045_s6 + $0x38] sm:$0xff] %v2682_v10  ;;  %v2616_v13 = vadd.f32 %v2615_v54, %v2567_v0 }
 0x1bc   : > { %v2647_v12 = vmul.f32 %v4331_v61, %v2616_v13 }
 0x1bd   : > { %v2519_v17 = vpop.f32.mrf.mxu2 }
 0x1be   : > { %v2667_v34 = vadd.f32 %v4336_v11, %v2647_v12  ;;  %v2520_v43 = vadd.f32 %v2519_v17, %v2471_v14 }
 0x1bf   : > { %v2568_v22 = vpop.f32.mrf.mxu3  ;;  %v2473_v24 = vpop.f32.mrf.mxu1 }
 0x1c0   : > { %v2683_v15 = vmax.f32 %v2667_v34, 0.0  ;;  %v2569_v25 = vadd.f32 %v2568_v22, %v2520_v43  ;;  %v2474_v23 = vadd.f32 %v2473_v24, %v4310_v37 }
 0x1c1   : > { %v2620_v19 = vpop.f32.mrf.mxu0 }
 0x1c2   : > { %2699 = vst [vmem:[%s4045_s6 + $0x40] sm:$0xff] %v2683_v15  ;;  %v2618_v26 = vadd.f32 %v2617_v8, %v2569_v25 }
 0x1c4   : > { %v2648_v27 = vmul.f32 %v4331_v61, %v2618_v26 }
 0x1c5   : > { %v2522_v31 = vpop.f32.mrf.mxu2 }
 0x1c6   : > { %v2668_v38 = vadd.f32 %v4336_v11, %v2648_v27  ;;  %v2523_v28 = vadd.f32 %v2522_v31, %v2474_v23 }
 0x1c7   : > { %v2571_v16 = vpop.f32.mrf.mxu3  ;;  %v2475_v39 = vpop.f32.mrf.mxu1 }
 0x1c8   : > { %v2684_v58 = vmax.f32 %v2668_v38, 0.0  ;;  %v2572_v57 = vadd.f32 %v2571_v16, %v2523_v28  ;;  %v2476_v48 = vadd.f32 %v2475_v39, %v4313_v33 }
 0x1c9   : > { %v2622_v40 = vpop.f32.mrf.mxu0 }
 0x1ca   : > { %2700 = vst [vmem:[%s4045_s6 + $0x48] sm:$0xff] %v2684_v58  ;;  %v2621_v42 = vadd.f32 %v2620_v19, %v2572_v57 }
 0x1cc   : > { %v2649_v44 = vmul.f32 %v4331_v61, %v2621_v42 }
 0x1cd   : > { %v2524_v49 = vpop.f32.mrf.mxu2 }
 0x1ce   : > { %v2669_v36 = vadd.f32 %v4336_v11, %v2649_v44  ;;  %v2525_v37 = vadd.f32 %v2524_v49, %v2476_v48 }
 0x1cf   : > { %v2573_v20 = vpop.f32.mrf.mxu3  ;;  %v2478_v46 = vpop.f32.mrf.mxu1 }
 0x1d0   : > { %v2685_v51 = vmax.f32 %v2669_v36, 0.0  ;;  %v2574_v52 = vadd.f32 %v2573_v20, %v2525_v37  ;;  %v2479_v56 = vadd.f32 %v2478_v46, %v4316_v50 }
 0x1d1   : > { %v2625_v55 = vpop.f32.mrf.mxu0 }
 0x1d2   : > { %2701 = vst [vmem:[%s4045_s6 + $0x50] sm:$0xff] %v2685_v51  ;;  %v2623_v53 = vadd.f32 %v2622_v40, %v2574_v52 }
 0x1d4   : > { %v2650_v41 = vmul.f32 %v4331_v61, %v2623_v53 }
 0x1d5   : > { %v2527_v35 = vpop.f32.mrf.mxu2 }
 0x1d6   : > { %v2670_v21 = vadd.f32 %v4336_v11, %v2650_v41  ;;  %v2528_v33 = vadd.f32 %v2527_v35, %v2479_v56 }
 0x1d7   : > { %v2576_v7 = vpop.f32.mrf.mxu3  ;;  %v2480_v32 = vpop.f32.mrf.mxu1 }
 0x1d8   : > { %v2686_v30 = vmax.f32 %v2670_v21, 0.0  ;;  %v2577_v59 = vadd.f32 %v2576_v7, %v2528_v33  ;;  %v2481_v62 = vadd.f32 %v2480_v32, %v4319_v45 }
 0x1d9   : > { %v2627_v54 = vpop.f32.mrf.mxu0 }
 0x1da   : > { %2702 = vst [vmem:[%s4045_s6 + $0x58] sm:$0xff] %v2686_v30  ;;  %v2626_v60 = vadd.f32 %v2625_v55, %v2577_v59 }
 0x1dc   : > { %v2651_v1 = vmul.f32 %v4331_v61, %v2626_v60 }
 0x1dd   : > { %v2529_v63 = vpop.f32.mrf.mxu2 }
 0x1de   : > { %v2671_v2 = vadd.f32 %v4336_v11, %v2651_v1  ;;  %v2530_v50 = vadd.f32 %v2529_v63, %v2481_v62 }
 0x1df   : > { %v2578_v3 = vpop.f32.mrf.mxu3  ;;  %v2483_v5 = vpop.f32.mrf.mxu1 }
 0x1e0   : > { %v2687_v4 = vmax.f32 %v2671_v2, 0.0  ;;  %v2579_v47 = vadd.f32 %v2578_v3, %v2530_v50  ;;  %v2484_v10 = vadd.f32 %v2483_v5, %v4322_v29 }
 0x1e1   : > { %v2630_v12 = vpop.f32.mrf.mxu0 }
 0x1e2   : > { %2703 = vst [vmem:[%s4045_s6 + $0x60] sm:$0xff] %v2687_v4  ;;  %v2628_v6 = vadd.f32 %v2627_v54, %v2579_v47 }
 0x1e4   : > { %v2652_v9 = vmul.f32 %v4331_v61, %v2628_v6 }
 0x1e5   : > { %v2532_v0 = vpop.f32.mrf.mxu2 }
 0x1e6   : > { %v2672_v45 = vadd.f32 %v4336_v11, %v2652_v9  ;;  %v2533_v8 = vadd.f32 %v2532_v0, %v2484_v10 }
 0x1e7   : > { %v2581_v13 = vpop.f32.mrf.mxu3  ;;  %v2485_v34 = vpop.f32.mrf.mxu1 }
 0x1e8   : > { %v2688_v14 = vmax.f32 %v2672_v45, 0.0  ;;  %v2582_v17 = vadd.f32 %v2581_v13, %v2533_v8  ;;  %v2486_v29 = vadd.f32 %v2485_v34, %v4325_v18 }
 0x1e9   : > { %v2632_v23 = vpop.f32.mrf.mxu0 }
 0x1ea   : > { %2704 = vst [vmem:[%s4045_s6 + $0x68] sm:$0xff] %v2688_v14  ;;  %v2631_v43 = vadd.f32 %v2630_v12, %v2582_v17 }
 0x1ec   : > { %v2653_v22 = vmul.f32 %v4331_v61, %v2631_v43 }
 0x1ed   : > { %v2534_v24 = vpop.f32.mrf.mxu2 }
 0x1ee   : > { %v2673_v15 = vadd.f32 %v4336_v11, %v2653_v22  ;;  %v2535_v25 = vadd.f32 %v2534_v24, %v2486_v29 }
 0x1ef   : > { %v2583_v19 = vpop.f32.mrf.mxu3 }
 0x1f0   : > { %v2689_v26 = vmax.f32 %v2673_v15, 0.0  ;;  %v2584_v27 = vadd.f32 %v2583_v19, %v2535_v25 }
 0x1f2   : > { %2705 = vst [vmem:[%s4045_s6 + $0x70] sm:$0xff] %v2689_v26  ;;  %v2633_v31 = vadd.f32 %v2632_v23, %v2584_v27 }
 0x1f4   : > { %v2654_v18 = vmul.f32 %v4331_v61, %v2633_v31 }
 0x1f6   : > { %v2674_v38 = vadd.f32 %v4336_v11, %v2654_v18 }
 0x1f8   : > { %v2690_v28 = vmax.f32 %v2674_v38, 0.0 }
 0x1fa   : > { %2706 = vst [vmem:[%s4045_s6 + $0x78] sm:$0xff] %v2690_v28 }
 0x1fb   : > { %3833 = shalt.err (!%p3830_p0)
}
 0x1fc   : > { %s3912_s6 = smov 128   ;;  %s3913_s27 = smov 8  }
 0x1fd   : > { %3667 = dma.vmem_to_hbm [thread:$0]  (%p3991_p3), %s2724_s7, 2048, %s2726_s13, %s2708_s24, %s3912_s6, %s3912_s6, %s3913_s27  }
 0x1fe PF: > { %p3679_p1 = scmp.ge.s32.totalorder %s3906_s22, 2  ;;  %s2740_s5 = sand.u32 1, %s3878_s15  }
 0x1ff   : > { %s2741_s9 = scalar_lea.sflag [#allocation7], %s2740_s5 }
 0x200   : > { %p3674_p2 = pnand %p3679_p1, %p4000_p8 }
 0x202   : > { %p3675_p4 = pneg %p3674_p2 }
 0x204   : > { %3873 = dma.done.wait (%p3675_p4), %s2741_s9, 2048  }
 0x205   : > { %3875 = vsyncadd (%p3675_p4), %s2741_s9, 4294965248  ;;  %s18_s22 = sadd.s32 1, %s3906_s22   ;;  %s4470_s19 = sld [smem:[#allocation16_spill]] }
 0x206   : > { %p15_p5 = scmp.ge.s32.totalorder %s18_s22, 6   ;;  %s4471_s29 = sld [smem:[#allocation17_spill]] }
 0x207   : > { %s4472_s21 = sld [smem:[#allocation18_spill]]  ;;  %s4473_s15 = smov %s3882_s16 }
 0x208   : > { %s4474_s16 = smov %s3886_s17  ;;  %s4475_s17 = smov %s4021_s12 }
 0x209   : > { %s4476_s18 = smov %s3898_s20  ;;  %17 = sbr.rel (!%p15_p5) target bundleno = 8 (0x8), region = 84 }
 0x20c   : > { %s4477_s20 = smov %s4471_s29 }
 0x20e   :  { %2747 = vsyncpa [#allocation6], 1 }
 0x20f   :  { %2749 = vsyncpa [#allocation6 + $0x1], 1 }
 0x210   :  { %2750 = vsyncpa [#allocation7], 1 }
 0x211   :  { %2752 = vsyncpa [#allocation7 + $0x1], 1 }
 0x212   :  { %2753 = vsyncmov [#allocation4] }
 0x215   :  { %s2754_s30 = vpop.sfrf %2753 }
 0x216   :  { %p3492_p3 = scmp.ne.s32.totalorder %s2754_s30, 0 }
 0x218   :  { %2758 = shalt.err (%p3492_p3)  }
 0x219   :  { %2760 = vsyncmov [#allocation4 + $0x1] }
 0x21c   :  { %s2761_s12 = vpop.sfrf %2760 }
 0x21d   :  { %p3493_p8 = scmp.ne.s32.totalorder %s2761_s12, 0 }
 0x21f   :  { %2765 = shalt.err (%p3493_p8)  }

</bundles_post_ra>
